<compile_context>
chip_gen: v6e
topology: v6e:2x2x1
jax: 0.10.0
libtpu: 0.0.40
codegen_flags: <defaults>
</compile_context>

<pallas_src>
import numpy as np
import jax
import jax.numpy as jnp
from jax import lax
from jax.experimental import pallas as pl
from jax.experimental.pallas import tpu as pltpu


def clip_loss_kernel(src_idx_ref, tgt_idx_ref, table_hbm, wenc_ref, scale_ref,
                     wcol_ref, wrow_ref, loss_ref, emb_ref, sem):
    """Full ClipModel.forward loss for one batch.

    src_idx_ref, tgt_idx_ref : (n,)     int32    SMEM (embedding row ids, must be in [0, V))
    table_hbm                : (V, H)   float32  HBM  (retrieval_embedding.weight, not DMA'd wholesale)
    wenc_ref                 : (H, D)   bfloat16 VMEM (source_encoder.weight.T, tied)
    scale_ref                : (1, 1)   float32  VMEM (logit_scale)
    wcol_ref, wrow_ref       : (n,1)/(1,n) f32   VMEM (batch['weight'], two layouts)
    loss_ref                 : (1, 1)   float32  VMEM (output scalar loss)
    emb_ref                  : (2n, H)  float32  VMEM scratch (gathered src|tgt rows)
    sem                      : (2n,)    DMA semaphores
    """
    n = wcol_ref.shape[0]

    # ---- gather the 2n embedding rows HBM -> VMEM with concurrent async DMAs ----
    # Start all copies first so the DMA engines overlap, then wait once.
    for i in range(n):
        si = src_idx_ref[i]
        ti = tgt_idx_ref[i]
        pltpu.make_async_copy(table_hbm.at[pl.ds(si, 1), :],
                              emb_ref.at[pl.ds(i, 1), :],
                              sem.at[i]).start()
        pltpu.make_async_copy(table_hbm.at[pl.ds(ti, 1), :],
                              emb_ref.at[pl.ds(n + i, 1), :],
                              sem.at[n + i]).start()
    for i in range(2 * n):
        # The src slice only fixes the byte count for the wait; dst is the real row.
        pltpu.make_async_copy(table_hbm.at[pl.ds(0, 1), :],
                              emb_ref.at[pl.ds(i, 1), :],
                              sem.at[i]).wait()

    # ---- one combined tied-encoder matmul: bf16 inputs, f32 accumulation ----
    emb_bf16 = emb_ref[...].astype(jnp.bfloat16)                       # (2n, H)
    proj = jnp.dot(emb_bf16, wenc_ref[...],
                   preferred_element_type=jnp.float32)                 # (2n, D) f32

    S_p = proj[:n, :]                                                  # (n, D)
    T_p = proj[n:, :]                                                  # (n, D)

    # ---- F.normalize(x, dim=1): x / max(||x||_2, 1e-12) (kept in f32) ----
    eps = jnp.float32(1e-12)
    s_norm = jnp.sqrt(jnp.sum(S_p * S_p, axis=1, keepdims=True))
    t_norm = jnp.sqrt(jnp.sum(T_p * T_p, axis=1, keepdims=True))
    S_e = S_p / jnp.maximum(s_norm, eps)
    T_e = T_p / jnp.maximum(t_norm, eps)

    # ---- fold exp(logit_scale) into S_e once (n x D), not into the (n x n) logits ----
    S_es = S_e * jnp.exp(scale_ref[...])                               # (n, D)

    # ---- logits[i, j] = exp(scale) * <S_e[i], T_e[j]> : NT matmul, no transpose ----
    logits = lax.dot_general(S_es, T_e, (((1,), (1,)), ((), ())),
                             preferred_element_type=jnp.float32)       # (n, n)
    # diag(logits) == diag(logits.T); reuse for both CE directions.
    diag = jnp.sum(S_es * T_e, axis=1, keepdims=True)                  # (n, 1)

    # ---- weighted cross-entropy in both directions, labels = arange(n) ----
    w_col = wcol_ref[...]                                              # (n, 1)
    w_row = wrow_ref[...]                                              # (1, n)
    wsum = jnp.sum(w_col, axis=0, keepdims=True)                       # (1, 1)
    diag_w = jnp.sum(diag * w_col, axis=0, keepdims=True)              # (1, 1)

    # rows of logits -> loss_s
    m_r = jnp.max(logits, axis=1, keepdims=True)
    lse_r = m_r + jnp.log(jnp.sum(jnp.exp(logits - m_r), axis=1, keepdims=True))  # (n, 1)
    loss_s = jnp.sum(lse_r * w_col, axis=0, keepdims=True) - diag_w    # (1, 1)

    # columns of logits (== rows of logits.T) -> loss_t, no transpose materialized
    m_c = jnp.max(logits, axis=0, keepdims=True)
    lse_c = m_c + jnp.log(jnp.sum(jnp.exp(logits - m_c), axis=0, keepdims=True))  # (1, n)
    loss_t = jnp.sum(lse_c * w_row, axis=1, keepdims=True) - diag_w    # (1, 1)

    loss_ref[...] = 0.5 * (loss_s + loss_t) / wsum


def clip_forward(src_idx, tgt_idx, table, w_enc_t, logit_scale, weights):
    n = src_idx.shape[0]
    hidden = table.shape[1]

    loss = pl.pallas_call(
        clip_loss_kernel,
        out_shape=jax.ShapeDtypeStruct((1, 1), jnp.float32),
        in_specs=[
            pl.BlockSpec(memory_space=pltpu.MemorySpace.SMEM),   # src indices
            pl.BlockSpec(memory_space=pltpu.MemorySpace.SMEM),   # tgt indices
            pl.BlockSpec(memory_space=pl.ANY),                   # embedding table (stays in HBM)
            pl.BlockSpec(memory_space=pltpu.MemorySpace.VMEM),   # encoder weight.T (bf16)
            pl.BlockSpec(memory_space=pltpu.MemorySpace.VMEM),   # logit_scale (1,1)
            pl.BlockSpec(memory_space=pltpu.MemorySpace.VMEM),   # weights (n,1)
            pl.BlockSpec(memory_space=pltpu.MemorySpace.VMEM),   # weights (1,n)
        ],
        out_specs=pl.BlockSpec(memory_space=pltpu.MemorySpace.VMEM),
        scratch_shapes=[
            pltpu.VMEM((2 * n, hidden), jnp.float32),            # gathered src|tgt rows
            pltpu.SemaphoreType.DMA((2 * n,)),                   # one sem per row DMA
        ],
        compiler_params=pltpu.CompilerParams(vmem_limit_bytes=16 * 1024 * 1024),
    )(src_idx.astype(jnp.int32), tgt_idx.astype(jnp.int32), table,
      w_enc_t.astype(jnp.bfloat16),
      logit_scale.reshape(1, 1).astype(jnp.float32),
      weights.reshape(n, 1).astype(jnp.float32),
      weights.reshape(1, n).astype(jnp.float32))
    return loss[0, 0]


def clip_forward_ref(src_idx, tgt_idx, table, w_enc_t, logit_scale, weights):
    """Pure-JAX f32 reference (mirrors the PyTorch forward exactly)."""
    S_f = table[src_idx]
    T_f = table[tgt_idx]
    S_p = S_f @ w_enc_t
    T_p = T_f @ w_enc_t

    def l2n(x):
        return x / jnp.maximum(jnp.linalg.norm(x, axis=1, keepdims=True), 1e-12)

    S_e, T_e = l2n(S_p), l2n(T_p)
    logits = S_e @ T_e.T * jnp.exp(logit_scale)

    def ce(lg):
        return jax.scipy.special.logsumexp(lg, axis=1) - jnp.diagonal(lg)

    wsum = jnp.sum(weights)
    loss_s = jnp.sum(ce(logits) * weights) / wsum
    loss_t = jnp.sum(ce(logits.T) * weights) / wsum
    return 0.5 * (loss_s + loss_t)


if __name__ == "__main__":
    # Small synthetic config consistent with the module's forward.
    vocab_size = 64
    hidden = 2048          # hard-coded in the PyTorch module
    embed_dim = 32
    n = 8                  # batch size

    key = jax.random.PRNGKey(0)
    k_tab, k_w, k_src, k_tgt, k_wt = jax.random.split(key, 5)

    # Deterministic synthetic parameters (no checkpoint loading).
    table = jax.random.normal(k_tab, (vocab_size, hidden), jnp.float32) * 0.02
    # nn.Linear(2048, embed_dim, bias=False).weight has shape (embed_dim, 2048);
    # pass its transpose so the kernel computes x @ W.T as x @ w_enc_t.
    w_enc = jax.random.normal(k_w, (embed_dim, hidden), jnp.float32) / np.sqrt(hidden)
    w_enc_t = w_enc.T
    logit_scale = jnp.asarray(np.log(1.0 / 0.07), jnp.float32)

    # Batch (indices are valid by construction; the kernel does no bounds check).
    src_idx = jax.random.randint(k_src, (n,), 0, vocab_size, dtype=jnp.int32)
    tgt_idx = jax.random.randint(k_tgt, (n,), 0, vocab_size, dtype=jnp.int32)
    weights = jax.random.uniform(k_wt, (n,), jnp.float32, minval=0.5, maxval=1.5)

    loss = clip_forward(src_idx, tgt_idx, table, w_enc_t, logit_scale, weights)
    loss = jax.block_until_ready(loss)

    loss_ref = clip_forward_ref(src_idx, tgt_idx, table, w_enc_t, logit_scale, weights)
    # bf16 MXU inputs (f32 accumulate) vs. f32 reference -> 2e-2 tolerance.
    np.testing.assert_allclose(np.asarray(loss), np.asarray(loss_ref),
                               rtol=2e-2, atol=2e-2)

    print("KERNEL_OK")
</pallas_src>

<mosaic_0001>
module attributes {stable_mosaic.version = 11 : i64} {
  func.func @clip_loss_kernel(%arg0: memref<8xi32, #tpu.memory_space<smem>>, %arg1: memref<8xi32, #tpu.memory_space<smem>>, %arg2: memref<64x2048xf32, #tpu.memory_space<any>>, %arg3: memref<2048x32xbf16, #tpu.memory_space<vmem>>, %arg4: memref<1x1xf32, #tpu.memory_space<vmem>>, %arg5: memref<8x1xf32, #tpu.memory_space<vmem>>, %arg6: memref<1x8xf32, #tpu.memory_space<vmem>>, %arg7: memref<1x1xf32, #tpu.memory_space<vmem>>, %arg8: memref<16x2048xf32, #tpu.memory_space<vmem>>, %arg9: memref<16x!tpu.dma_semaphore, #tpu.memory_space<semaphore_mem>>) attributes {dimension_semantics = [], scalar_prefetch = 0 : i64, scratch_operands = 2 : i64, tpu.core_type = #tpu.core_type<tc>} {
    %c0 = arith.constant 0 : index
    %0 = memref.load %arg0[%c0] : memref<8xi32, #tpu.memory_space<smem>>
    %c0_0 = arith.constant 0 : index
    %1 = memref.load %arg1[%c0_0] : memref<8xi32, #tpu.memory_space<smem>>
    %c0_i32 = arith.constant 0 : i32
    %c0_i32_1 = arith.constant 0 : i32
    %2 = tpu.memref_slice %arg2[%0, %c0_i32_1] : memref<64x2048xf32, #tpu.memory_space<any>> -> memref<1x2048xf32, #tpu.memory_space<any>>
    %c0_i32_2 = arith.constant 0 : i32
    %c0_i32_3 = arith.constant 0 : i32
    %3 = tpu.memref_slice %arg8[%c0_i32_2, %c0_i32_3] : memref<16x2048xf32, #tpu.memory_space<vmem>> -> memref<1x2048xf32, #tpu.memory_space<vmem>>
    %4 = tpu.memref_slice %arg9[%c0_i32] : memref<16x!tpu.dma_semaphore, #tpu.memory_space<semaphore_mem>> -> memref<1x!tpu.dma_semaphore, #tpu.memory_space<semaphore_mem>>
    %5 = tpu.memref_squeeze %4 : memref<1x!tpu.dma_semaphore, #tpu.memory_space<semaphore_mem>> -> memref<!tpu.dma_semaphore, #tpu.memory_space<semaphore_mem>>
    tpu.enqueue_dma source(%2 : memref<1x2048xf32, #tpu.memory_space<any>>) target(%3 : memref<1x2048xf32, #tpu.memory_space<vmem>>) target_semaphore(%5 : memref<!tpu.dma_semaphore, #tpu.memory_space<semaphore_mem>>)
    %c8_i32 = arith.constant 8 : i32
    %c0_i32_4 = arith.constant 0 : i32
    %6 = tpu.memref_slice %arg2[%1, %c0_i32_4] : memref<64x2048xf32, #tpu.memory_space<any>> -> memref<1x2048xf32, #tpu.memory_space<any>>
    %c8_i32_5 = arith.constant 8 : i32
    %c0_i32_6 = arith.constant 0 : i32
    %7 = tpu.memref_slice %arg8[%c8_i32_5, %c0_i32_6] : memref<16x2048xf32, #tpu.memory_space<vmem>> -> memref<1x2048xf32, #tpu.memory_space<vmem>>
    %8 = tpu.memref_slice %arg9[%c8_i32] : memref<16x!tpu.dma_semaphore, #tpu.memory_space<semaphore_mem>> -> memref<1x!tpu.dma_semaphore, #tpu.memory_space<semaphore_mem>>
    %9 = tpu.memref_squeeze %8 : memref<1x!tpu.dma_semaphore, #tpu.memory_space<semaphore_mem>> -> memref<!tpu.dma_semaphore, #tpu.memory_space<semaphore_mem>>
    tpu.enqueue_dma source(%6 : memref<1x2048xf32, #tpu.memory_space<any>>) target(%7 : memref<1x2048xf32, #tpu.memory_space<vmem>>) target_semaphore(%9 : memref<!tpu.dma_semaphore, #tpu.memory_space<semaphore_mem>>)
    %c1 = arith.constant 1 : index
    %10 = memref.load %arg0[%c1] : memref<8xi32, #tpu.memory_space<smem>>
    %c1_7 = arith.constant 1 : index
    %11 = memref.load %arg1[%c1_7] : memref<8xi32, #tpu.memory_space<smem>>
    %c1_i32 = arith.constant 1 : i32
    %c0_i32_8 = arith.constant 0 : i32
    %12 = tpu.memref_slice %arg2[%10, %c0_i32_8] : memref<64x2048xf32, #tpu.memory_space<any>> -> memref<1x2048xf32, #tpu.memory_space<any>>
    %c1_i32_9 = arith.constant 1 : i32
    %c0_i32_10 = arith.constant 0 : i32
    %13 = tpu.memref_slice %arg8[%c1_i32_9, %c0_i32_10] : memref<16x2048xf32, #tpu.memory_space<vmem>> -> memref<1x2048xf32, #tpu.memory_space<vmem>>
    %14 = tpu.memref_slice %arg9[%c1_i32] : memref<16x!tpu.dma_semaphore, #tpu.memory_space<semaphore_mem>> -> memref<1x!tpu.dma_semaphore, #tpu.memory_space<semaphore_mem>>
    %15 = tpu.memref_squeeze %14 : memref<1x!tpu.dma_semaphore, #tpu.memory_space<semaphore_mem>> -> memref<!tpu.dma_semaphore, #tpu.memory_space<semaphore_mem>>
    tpu.enqueue_dma source(%12 : memref<1x2048xf32, #tpu.memory_space<any>>) target(%13 : memref<1x2048xf32, #tpu.memory_space<vmem>>) target_semaphore(%15 : memref<!tpu.dma_semaphore, #tpu.memory_space<semaphore_mem>>)
    %c9_i32 = arith.constant 9 : i32
    %c0_i32_11 = arith.constant 0 : i32
    %16 = tpu.memref_slice %arg2[%11, %c0_i32_11] : memref<64x2048xf32, #tpu.memory_space<any>> -> memref<1x2048xf32, #tpu.memory_space<any>>
    %c9_i32_12 = arith.constant 9 : i32
    %c0_i32_13 = arith.constant 0 : i32
    %17 = tpu.memref_slice %arg8[%c9_i32_12, %c0_i32_13] : memref<16x2048xf32, #tpu.memory_space<vmem>> -> memref<1x2048xf32, #tpu.memory_space<vmem>>
    %18 = tpu.memref_slice %arg9[%c9_i32] : memref<16x!tpu.dma_semaphore, #tpu.memory_space<semaphore_mem>> -> memref<1x!tpu.dma_semaphore, #tpu.memory_space<semaphore_mem>>
    %19 = tpu.memref_squeeze %18 : memref<1x!tpu.dma_semaphore, #tpu.memory_space<semaphore_mem>> -> memref<!tpu.dma_semaphore, #tpu.memory_space<semaphore_mem>>
    tpu.enqueue_dma source(%16 : memref<1x2048xf32, #tpu.memory_space<any>>) target(%17 : memref<1x2048xf32, #tpu.memory_space<vmem>>) target_semaphore(%19 : memref<!tpu.dma_semaphore, #tpu.memory_space<semaphore_mem>>)
    %c2 = arith.constant 2 : index
    %20 = memref.load %arg0[%c2] : memref<8xi32, #tpu.memory_space<smem>>
    %c2_14 = arith.constant 2 : index
    %21 = memref.load %arg1[%c2_14] : memref<8xi32, #tpu.memory_space<smem>>
    %c2_i32 = arith.constant 2 : i32
    %c0_i32_15 = arith.constant 0 : i32
    %22 = tpu.memref_slice %arg2[%20, %c0_i32_15] : memref<64x2048xf32, #tpu.memory_space<any>> -> memref<1x2048xf32, #tpu.memory_space<any>>
    %c2_i32_16 = arith.constant 2 : i32
    %c0_i32_17 = arith.constant 0 : i32
    %23 = tpu.memref_slice %arg8[%c2_i32_16, %c0_i32_17] : memref<16x2048xf32, #tpu.memory_space<vmem>> -> memref<1x2048xf32, #tpu.memory_space<vmem>>
    %24 = tpu.memref_slice %arg9[%c2_i32] : memref<16x!tpu.dma_semaphore, #tpu.memory_space<semaphore_mem>> -> memref<1x!tpu.dma_semaphore, #tpu.memory_space<semaphore_mem>>
    %25 = tpu.memref_squeeze %24 : memref<1x!tpu.dma_semaphore, #tpu.memory_space<semaphore_mem>> -> memref<!tpu.dma_semaphore, #tpu.memory_space<semaphore_mem>>
    tpu.enqueue_dma source(%22 : memref<1x2048xf32, #tpu.memory_space<any>>) target(%23 : memref<1x2048xf32, #tpu.memory_space<vmem>>) target_semaphore(%25 : memref<!tpu.dma_semaphore, #tpu.memory_space<semaphore_mem>>)
    %c10_i32 = arith.constant 10 : i32
    %c0_i32_18 = arith.constant 0 : i32
    %26 = tpu.memref_slice %arg2[%21, %c0_i32_18] : memref<64x2048xf32, #tpu.memory_space<any>> -> memref<1x2048xf32, #tpu.memory_space<any>>
    %c10_i32_19 = arith.constant 10 : i32
    %c0_i32_20 = arith.constant 0 : i32
    %27 = tpu.memref_slice %arg8[%c10_i32_19, %c0_i32_20] : memref<16x2048xf32, #tpu.memory_space<vmem>> -> memref<1x2048xf32, #tpu.memory_space<vmem>>
    %28 = tpu.memref_slice %arg9[%c10_i32] : memref<16x!tpu.dma_semaphore, #tpu.memory_space<semaphore_mem>> -> memref<1x!tpu.dma_semaphore, #tpu.memory_space<semaphore_mem>>
    %29 = tpu.memref_squeeze %28 : memref<1x!tpu.dma_semaphore, #tpu.memory_space<semaphore_mem>> -> memref<!tpu.dma_semaphore, #tpu.memory_space<semaphore_mem>>
    tpu.enqueue_dma source(%26 : memref<1x2048xf32, #tpu.memory_space<any>>) target(%27 : memref<1x2048xf32, #tpu.memory_space<vmem>>) target_semaphore(%29 : memref<!tpu.dma_semaphore, #tpu.memory_space<semaphore_mem>>)
    %c3 = arith.constant 3 : index
    %30 = memref.load %arg0[%c3] : memref<8xi32, #tpu.memory_space<smem>>
    %c3_21 = arith.constant 3 : index
    %31 = memref.load %arg1[%c3_21] : memref<8xi32, #tpu.memory_space<smem>>
    %c3_i32 = arith.constant 3 : i32
    %c0_i32_22 = arith.constant 0 : i32
    %32 = tpu.memref_slice %arg2[%30, %c0_i32_22] : memref<64x2048xf32, #tpu.memory_space<any>> -> memref<1x2048xf32, #tpu.memory_space<any>>
    %c3_i32_23 = arith.constant 3 : i32
    %c0_i32_24 = arith.constant 0 : i32
    %33 = tpu.memref_slice %arg8[%c3_i32_23, %c0_i32_24] : memref<16x2048xf32, #tpu.memory_space<vmem>> -> memref<1x2048xf32, #tpu.memory_space<vmem>>
    %34 = tpu.memref_slice %arg9[%c3_i32] : memref<16x!tpu.dma_semaphore, #tpu.memory_space<semaphore_mem>> -> memref<1x!tpu.dma_semaphore, #tpu.memory_space<semaphore_mem>>
    %35 = tpu.memref_squeeze %34 : memref<1x!tpu.dma_semaphore, #tpu.memory_space<semaphore_mem>> -> memref<!tpu.dma_semaphore, #tpu.memory_space<semaphore_mem>>
    tpu.enqueue_dma source(%32 : memref<1x2048xf32, #tpu.memory_space<any>>) target(%33 : memref<1x2048xf32, #tpu.memory_space<vmem>>) target_semaphore(%35 : memref<!tpu.dma_semaphore, #tpu.memory_space<semaphore_mem>>)
    %c11_i32 = arith.constant 11 : i32
    %c0_i32_25 = arith.constant 0 : i32
    %36 = tpu.memref_slice %arg2[%31, %c0_i32_25] : memref<64x2048xf32, #tpu.memory_space<any>> -> memref<1x2048xf32, #tpu.memory_space<any>>
    %c11_i32_26 = arith.constant 11 : i32
    %c0_i32_27 = arith.constant 0 : i32
    %37 = tpu.memref_slice %arg8[%c11_i32_26, %c0_i32_27] : memref<16x2048xf32, #tpu.memory_space<vmem>> -> memref<1x2048xf32, #tpu.memory_space<vmem>>
    %38 = tpu.memref_slice %arg9[%c11_i32] : memref<16x!tpu.dma_semaphore, #tpu.memory_space<semaphore_mem>> -> memref<1x!tpu.dma_semaphore, #tpu.memory_space<semaphore_mem>>
    %39 = tpu.memref_squeeze %38 : memref<1x!tpu.dma_semaphore, #tpu.memory_space<semaphore_mem>> -> memref<!tpu.dma_semaphore, #tpu.memory_space<semaphore_mem>>
    tpu.enqueue_dma source(%36 : memref<1x2048xf32, #tpu.memory_space<any>>) target(%37 : memref<1x2048xf32, #tpu.memory_space<vmem>>) target_semaphore(%39 : memref<!tpu.dma_semaphore, #tpu.memory_space<semaphore_mem>>)
    %c4 = arith.constant 4 : index
    %40 = memref.load %arg0[%c4] : memref<8xi32, #tpu.memory_space<smem>>
    %c4_28 = arith.constant 4 : index
    %41 = memref.load %arg1[%c4_28] : memref<8xi32, #tpu.memory_space<smem>>
    %c4_i32 = arith.constant 4 : i32
    %c0_i32_29 = arith.constant 0 : i32
    %42 = tpu.memref_slice %arg2[%40, %c0_i32_29] : memref<64x2048xf32, #tpu.memory_space<any>> -> memref<1x2048xf32, #tpu.memory_space<any>>
    %c4_i32_30 = arith.constant 4 : i32
    %c0_i32_31 = arith.constant 0 : i32
    %43 = tpu.memref_slice %arg8[%c4_i32_30, %c0_i32_31] : memref<16x2048xf32, #tpu.memory_space<vmem>> -> memref<1x2048xf32, #tpu.memory_space<vmem>>
    %44 = tpu.memref_slice %arg9[%c4_i32] : memref<16x!tpu.dma_semaphore, #tpu.memory_space<semaphore_mem>> -> memref<1x!tpu.dma_semaphore, #tpu.memory_space<semaphore_mem>>
    %45 = tpu.memref_squeeze %44 : memref<1x!tpu.dma_semaphore, #tpu.memory_space<semaphore_mem>> -> memref<!tpu.dma_semaphore, #tpu.memory_space<semaphore_mem>>
    tpu.enqueue_dma source(%42 : memref<1x2048xf32, #tpu.memory_space<any>>) target(%43 : memref<1x2048xf32, #tpu.memory_space<vmem>>) target_semaphore(%45 : memref<!tpu.dma_semaphore, #tpu.memory_space<semaphore_mem>>)
    %c12_i32 = arith.constant 12 : i32
    %c0_i32_32 = arith.constant 0 : i32
    %46 = tpu.memref_slice %arg2[%41, %c0_i32_32] : memref<64x2048xf32, #tpu.memory_space<any>> -> memref<1x2048xf32, #tpu.memory_space<any>>
    %c12_i32_33 = arith.constant 12 : i32
    %c0_i32_34 = arith.constant 0 : i32
    %47 = tpu.memref_slice %arg8[%c12_i32_33, %c0_i32_34] : memref<16x2048xf32, #tpu.memory_space<vmem>> -> memref<1x2048xf32, #tpu.memory_space<vmem>>
    %48 = tpu.memref_slice %arg9[%c12_i32] : memref<16x!tpu.dma_semaphore, #tpu.memory_space<semaphore_mem>> -> memref<1x!tpu.dma_semaphore, #tpu.memory_space<semaphore_mem>>
    %49 = tpu.memref_squeeze %48 : memref<1x!tpu.dma_semaphore, #tpu.memory_space<semaphore_mem>> -> memref<!tpu.dma_semaphore, #tpu.memory_space<semaphore_mem>>
    tpu.enqueue_dma source(%46 : memref<1x2048xf32, #tpu.memory_space<any>>) target(%47 : memref<1x2048xf32, #tpu.memory_space<vmem>>) target_semaphore(%49 : memref<!tpu.dma_semaphore, #tpu.memory_space<semaphore_mem>>)
    %c5 = arith.constant 5 : index
    %50 = memref.load %arg0[%c5] : memref<8xi32, #tpu.memory_space<smem>>
    %c5_35 = arith.constant 5 : index
    %51 = memref.load %arg1[%c5_35] : memref<8xi32, #tpu.memory_space<smem>>
    %c5_i32 = arith.constant 5 : i32
    %c0_i32_36 = arith.constant 0 : i32
    %52 = tpu.memref_slice %arg2[%50, %c0_i32_36] : memref<64x2048xf32, #tpu.memory_space<any>> -> memref<1x2048xf32, #tpu.memory_space<any>>
    %c5_i32_37 = arith.constant 5 : i32
    %c0_i32_38 = arith.constant 0 : i32
    %53 = tpu.memref_slice %arg8[%c5_i32_37, %c0_i32_38] : memref<16x2048xf32, #tpu.memory_space<vmem>> -> memref<1x2048xf32, #tpu.memory_space<vmem>>
    %54 = tpu.memref_slice %arg9[%c5_i32] : memref<16x!tpu.dma_semaphore, #tpu.memory_space<semaphore_mem>> -> memref<1x!tpu.dma_semaphore, #tpu.memory_space<semaphore_mem>>
    %55 = tpu.memref_squeeze %54 : memref<1x!tpu.dma_semaphore, #tpu.memory_space<semaphore_mem>> -> memref<!tpu.dma_semaphore, #tpu.memory_space<semaphore_mem>>
    tpu.enqueue_dma source(%52 : memref<1x2048xf32, #tpu.memory_space<any>>) target(%53 : memref<1x2048xf32, #tpu.memory_space<vmem>>) target_semaphore(%55 : memref<!tpu.dma_semaphore, #tpu.memory_space<semaphore_mem>>)
    %c13_i32 = arith.constant 13 : i32
    %c0_i32_39 = arith.constant 0 : i32
    %56 = tpu.memref_slice %arg2[%51, %c0_i32_39] : memref<64x2048xf32, #tpu.memory_space<any>> -> memref<1x2048xf32, #tpu.memory_space<any>>
    %c13_i32_40 = arith.constant 13 : i32
    %c0_i32_41 = arith.constant 0 : i32
    %57 = tpu.memref_slice %arg8[%c13_i32_40, %c0_i32_41] : memref<16x2048xf32, #tpu.memory_space<vmem>> -> memref<1x2048xf32, #tpu.memory_space<vmem>>
    %58 = tpu.memref_slice %arg9[%c13_i32] : memref<16x!tpu.dma_semaphore, #tpu.memory_space<semaphore_mem>> -> memref<1x!tpu.dma_semaphore, #tpu.memory_space<semaphore_mem>>
    %59 = tpu.memref_squeeze %58 : memref<1x!tpu.dma_semaphore, #tpu.memory_space<semaphore_mem>> -> memref<!tpu.dma_semaphore, #tpu.memory_space<semaphore_mem>>
    tpu.enqueue_dma source(%56 : memref<1x2048xf32, #tpu.memory_space<any>>) target(%57 : memref<1x2048xf32, #tpu.memory_space<vmem>>) target_semaphore(%59 : memref<!tpu.dma_semaphore, #tpu.memory_space<semaphore_mem>>)
    %c6 = arith.constant 6 : index
    %60 = memref.load %arg0[%c6] : memref<8xi32, #tpu.memory_space<smem>>
    %c6_42 = arith.constant 6 : index
    %61 = memref.load %arg1[%c6_42] : memref<8xi32, #tpu.memory_space<smem>>
    %c6_i32 = arith.constant 6 : i32
    %c0_i32_43 = arith.constant 0 : i32
    %62 = tpu.memref_slice %arg2[%60, %c0_i32_43] : memref<64x2048xf32, #tpu.memory_space<any>> -> memref<1x2048xf32, #tpu.memory_space<any>>
    %c6_i32_44 = arith.constant 6 : i32
    %c0_i32_45 = arith.constant 0 : i32
    %63 = tpu.memref_slice %arg8[%c6_i32_44, %c0_i32_45] : memref<16x2048xf32, #tpu.memory_space<vmem>> -> memref<1x2048xf32, #tpu.memory_space<vmem>>
    %64 = tpu.memref_slice %arg9[%c6_i32] : memref<16x!tpu.dma_semaphore, #tpu.memory_space<semaphore_mem>> -> memref<1x!tpu.dma_semaphore, #tpu.memory_space<semaphore_mem>>
    %65 = tpu.memref_squeeze %64 : memref<1x!tpu.dma_semaphore, #tpu.memory_space<semaphore_mem>> -> memref<!tpu.dma_semaphore, #tpu.memory_space<semaphore_mem>>
    tpu.enqueue_dma source(%62 : memref<1x2048xf32, #tpu.memory_space<any>>) target(%63 : memref<1x2048xf32, #tpu.memory_space<vmem>>) target_semaphore(%65 : memref<!tpu.dma_semaphore, #tpu.memory_space<semaphore_mem>>)
    %c14_i32 = arith.constant 14 : i32
    %c0_i32_46 = arith.constant 0 : i32
    %66 = tpu.memref_slice %arg2[%61, %c0_i32_46] : memref<64x2048xf32, #tpu.memory_space<any>> -> memref<1x2048xf32, #tpu.memory_space<any>>
    %c14_i32_47 = arith.constant 14 : i32
    %c0_i32_48 = arith.constant 0 : i32
    %67 = tpu.memref_slice %arg8[%c14_i32_47, %c0_i32_48] : memref<16x2048xf32, #tpu.memory_space<vmem>> -> memref<1x2048xf32, #tpu.memory_space<vmem>>
    %68 = tpu.memref_slice %arg9[%c14_i32] : memref<16x!tpu.dma_semaphore, #tpu.memory_space<semaphore_mem>> -> memref<1x!tpu.dma_semaphore, #tpu.memory_space<semaphore_mem>>
    %69 = tpu.memref_squeeze %68 : memref<1x!tpu.dma_semaphore, #tpu.memory_space<semaphore_mem>> -> memref<!tpu.dma_semaphore, #tpu.memory_space<semaphore_mem>>
    tpu.enqueue_dma source(%66 : memref<1x2048xf32, #tpu.memory_space<any>>) target(%67 : memref<1x2048xf32, #tpu.memory_space<vmem>>) target_semaphore(%69 : memref<!tpu.dma_semaphore, #tpu.memory_space<semaphore_mem>>)
    %c7 = arith.constant 7 : index
    %70 = memref.load %arg0[%c7] : memref<8xi32, #tpu.memory_space<smem>>
    %c7_49 = arith.constant 7 : index
    %71 = memref.load %arg1[%c7_49] : memref<8xi32, #tpu.memory_space<smem>>
    %c7_i32 = arith.constant 7 : i32
    %c0_i32_50 = arith.constant 0 : i32
    %72 = tpu.memref_slice %arg2[%70, %c0_i32_50] : memref<64x2048xf32, #tpu.memory_space<any>> -> memref<1x2048xf32, #tpu.memory_space<any>>
    %c7_i32_51 = arith.constant 7 : i32
    %c0_i32_52 = arith.constant 0 : i32
    %73 = tpu.memref_slice %arg8[%c7_i32_51, %c0_i32_52] : memref<16x2048xf32, #tpu.memory_space<vmem>> -> memref<1x2048xf32, #tpu.memory_space<vmem>>
    %74 = tpu.memref_slice %arg9[%c7_i32] : memref<16x!tpu.dma_semaphore, #tpu.memory_space<semaphore_mem>> -> memref<1x!tpu.dma_semaphore, #tpu.memory_space<semaphore_mem>>
    %75 = tpu.memref_squeeze %74 : memref<1x!tpu.dma_semaphore, #tpu.memory_space<semaphore_mem>> -> memref<!tpu.dma_semaphore, #tpu.memory_space<semaphore_mem>>
    tpu.enqueue_dma source(%72 : memref<1x2048xf32, #tpu.memory_space<any>>) target(%73 : memref<1x2048xf32, #tpu.memory_space<vmem>>) target_semaphore(%75 : memref<!tpu.dma_semaphore, #tpu.memory_space<semaphore_mem>>)
    %c15_i32 = arith.constant 15 : i32
    %c0_i32_53 = arith.constant 0 : i32
    %76 = tpu.memref_slice %arg2[%71, %c0_i32_53] : memref<64x2048xf32, #tpu.memory_space<any>> -> memref<1x2048xf32, #tpu.memory_space<any>>
    %c15_i32_54 = arith.constant 15 : i32
    %c0_i32_55 = arith.constant 0 : i32
    %77 = tpu.memref_slice %arg8[%c15_i32_54, %c0_i32_55] : memref<16x2048xf32, #tpu.memory_space<vmem>> -> memref<1x2048xf32, #tpu.memory_space<vmem>>
    %78 = tpu.memref_slice %arg9[%c15_i32] : memref<16x!tpu.dma_semaphore, #tpu.memory_space<semaphore_mem>> -> memref<1x!tpu.dma_semaphore, #tpu.memory_space<semaphore_mem>>
    %79 = tpu.memref_squeeze %78 : memref<1x!tpu.dma_semaphore, #tpu.memory_space<semaphore_mem>> -> memref<!tpu.dma_semaphore, #tpu.memory_space<semaphore_mem>>
    tpu.enqueue_dma source(%76 : memref<1x2048xf32, #tpu.memory_space<any>>) target(%77 : memref<1x2048xf32, #tpu.memory_space<vmem>>) target_semaphore(%79 : memref<!tpu.dma_semaphore, #tpu.memory_space<semaphore_mem>>)
    %c0_i32_56 = arith.constant 0 : i32
    %c0_i32_57 = arith.constant 0 : i32
    %c0_i32_58 = arith.constant 0 : i32
    %80 = tpu.memref_slice %arg2[%c0_i32_57, %c0_i32_58] : memref<64x2048xf32, #tpu.memory_space<any>> -> memref<1x2048xf32, #tpu.memory_space<any>>
    %c0_i32_59 = arith.constant 0 : i32
    %c0_i32_60 = arith.constant 0 : i32
    %81 = tpu.memref_slice %arg8[%c0_i32_59, %c0_i32_60] : memref<16x2048xf32, #tpu.memory_space<vmem>> -> memref<1x2048xf32, #tpu.memory_space<vmem>>
    %82 = tpu.memref_slice %arg9[%c0_i32_56] : memref<16x!tpu.dma_semaphore, #tpu.memory_space<semaphore_mem>> -> memref<1x!tpu.dma_semaphore, #tpu.memory_space<semaphore_mem>>
    %83 = tpu.memref_squeeze %82 : memref<1x!tpu.dma_semaphore, #tpu.memory_space<semaphore_mem>> -> memref<!tpu.dma_semaphore, #tpu.memory_space<semaphore_mem>>
    tpu.wait_dma2 semaphore(%83 : memref<!tpu.dma_semaphore, #tpu.memory_space<semaphore_mem>>) src(%80 : memref<1x2048xf32, #tpu.memory_space<any>>) dst(%81 : memref<1x2048xf32, #tpu.memory_space<vmem>>)
    %c1_i32_61 = arith.constant 1 : i32
    %c0_i32_62 = arith.constant 0 : i32
    %c0_i32_63 = arith.constant 0 : i32
    %84 = tpu.memref_slice %arg2[%c0_i32_62, %c0_i32_63] : memref<64x2048xf32, #tpu.memory_space<any>> -> memref<1x2048xf32, #tpu.memory_space<any>>
    %c1_i32_64 = arith.constant 1 : i32
    %c0_i32_65 = arith.constant 0 : i32
    %85 = tpu.memref_slice %arg8[%c1_i32_64, %c0_i32_65] : memref<16x2048xf32, #tpu.memory_space<vmem>> -> memref<1x2048xf32, #tpu.memory_space<vmem>>
    %86 = tpu.memref_slice %arg9[%c1_i32_61] : memref<16x!tpu.dma_semaphore, #tpu.memory_space<semaphore_mem>> -> memref<1x!tpu.dma_semaphore, #tpu.memory_space<semaphore_mem>>
    %87 = tpu.memref_squeeze %86 : memref<1x!tpu.dma_semaphore, #tpu.memory_space<semaphore_mem>> -> memref<!tpu.dma_semaphore, #tpu.memory_space<semaphore_mem>>
    tpu.wait_dma2 semaphore(%87 : memref<!tpu.dma_semaphore, #tpu.memory_space<semaphore_mem>>) src(%84 : memref<1x2048xf32, #tpu.memory_space<any>>) dst(%85 : memref<1x2048xf32, #tpu.memory_space<vmem>>)
    %c2_i32_66 = arith.constant 2 : i32
    %c0_i32_67 = arith.constant 0 : i32
    %c0_i32_68 = arith.constant 0 : i32
    %88 = tpu.memref_slice %arg2[%c0_i32_67, %c0_i32_68] : memref<64x2048xf32, #tpu.memory_space<any>> -> memref<1x2048xf32, #tpu.memory_space<any>>
    %c2_i32_69 = arith.constant 2 : i32
    %c0_i32_70 = arith.constant 0 : i32
    %89 = tpu.memref_slice %arg8[%c2_i32_69, %c0_i32_70] : memref<16x2048xf32, #tpu.memory_space<vmem>> -> memref<1x2048xf32, #tpu.memory_space<vmem>>
    %90 = tpu.memref_slice %arg9[%c2_i32_66] : memref<16x!tpu.dma_semaphore, #tpu.memory_space<semaphore_mem>> -> memref<1x!tpu.dma_semaphore, #tpu.memory_space<semaphore_mem>>
    %91 = tpu.memref_squeeze %90 : memref<1x!tpu.dma_semaphore, #tpu.memory_space<semaphore_mem>> -> memref<!tpu.dma_semaphore, #tpu.memory_space<semaphore_mem>>
    tpu.wait_dma2 semaphore(%91 : memref<!tpu.dma_semaphore, #tpu.memory_space<semaphore_mem>>) src(%88 : memref<1x2048xf32, #tpu.memory_space<any>>) dst(%89 : memref<1x2048xf32, #tpu.memory_space<vmem>>)
    %c3_i32_71 = arith.constant 3 : i32
    %c0_i32_72 = arith.constant 0 : i32
    %c0_i32_73 = arith.constant 0 : i32
    %92 = tpu.memref_slice %arg2[%c0_i32_72, %c0_i32_73] : memref<64x2048xf32, #tpu.memory_space<any>> -> memref<1x2048xf32, #tpu.memory_space<any>>
    %c3_i32_74 = arith.constant 3 : i32
    %c0_i32_75 = arith.constant 0 : i32
    %93 = tpu.memref_slice %arg8[%c3_i32_74, %c0_i32_75] : memref<16x2048xf32, #tpu.memory_space<vmem>> -> memref<1x2048xf32, #tpu.memory_space<vmem>>
    %94 = tpu.memref_slice %arg9[%c3_i32_71] : memref<16x!tpu.dma_semaphore, #tpu.memory_space<semaphore_mem>> -> memref<1x!tpu.dma_semaphore, #tpu.memory_space<semaphore_mem>>
    %95 = tpu.memref_squeeze %94 : memref<1x!tpu.dma_semaphore, #tpu.memory_space<semaphore_mem>> -> memref<!tpu.dma_semaphore, #tpu.memory_space<semaphore_mem>>
    tpu.wait_dma2 semaphore(%95 : memref<!tpu.dma_semaphore, #tpu.memory_space<semaphore_mem>>) src(%92 : memref<1x2048xf32, #tpu.memory_space<any>>) dst(%93 : memref<1x2048xf32, #tpu.memory_space<vmem>>)
    %c4_i32_76 = arith.constant 4 : i32
    %c0_i32_77 = arith.constant 0 : i32
    %c0_i32_78 = arith.constant 0 : i32
    %96 = tpu.memref_slice %arg2[%c0_i32_77, %c0_i32_78] : memref<64x2048xf32, #tpu.memory_space<any>> -> memref<1x2048xf32, #tpu.memory_space<any>>
    %c4_i32_79 = arith.constant 4 : i32
    %c0_i32_80 = arith.constant 0 : i32
    %97 = tpu.memref_slice %arg8[%c4_i32_79, %c0_i32_80] : memref<16x2048xf32, #tpu.memory_space<vmem>> -> memref<1x2048xf32, #tpu.memory_space<vmem>>
    %98 = tpu.memref_slice %arg9[%c4_i32_76] : memref<16x!tpu.dma_semaphore, #tpu.memory_space<semaphore_mem>> -> memref<1x!tpu.dma_semaphore, #tpu.memory_space<semaphore_mem>>
    %99 = tpu.memref_squeeze %98 : memref<1x!tpu.dma_semaphore, #tpu.memory_space<semaphore_mem>> -> memref<!tpu.dma_semaphore, #tpu.memory_space<semaphore_mem>>
    tpu.wait_dma2 semaphore(%99 : memref<!tpu.dma_semaphore, #tpu.memory_space<semaphore_mem>>) src(%96 : memref<1x2048xf32, #tpu.memory_space<any>>) dst(%97 : memref<1x2048xf32, #tpu.memory_space<vmem>>)
    %c5_i32_81 = arith.constant 5 : i32
    %c0_i32_82 = arith.constant 0 : i32
    %c0_i32_83 = arith.constant 0 : i32
    %100 = tpu.memref_slice %arg2[%c0_i32_82, %c0_i32_83] : memref<64x2048xf32, #tpu.memory_space<any>> -> memref<1x2048xf32, #tpu.memory_space<any>>
    %c5_i32_84 = arith.constant 5 : i32
    %c0_i32_85 = arith.constant 0 : i32
    %101 = tpu.memref_slice %arg8[%c5_i32_84, %c0_i32_85] : memref<16x2048xf32, #tpu.memory_space<vmem>> -> memref<1x2048xf32, #tpu.memory_space<vmem>>
    %102 = tpu.memref_slice %arg9[%c5_i32_81] : memref<16x!tpu.dma_semaphore, #tpu.memory_space<semaphore_mem>> -> memref<1x!tpu.dma_semaphore, #tpu.memory_space<semaphore_mem>>
    %103 = tpu.memref_squeeze %102 : memref<1x!tpu.dma_semaphore, #tpu.memory_space<semaphore_mem>> -> memref<!tpu.dma_semaphore, #tpu.memory_space<semaphore_mem>>
    tpu.wait_dma2 semaphore(%103 : memref<!tpu.dma_semaphore, #tpu.memory_space<semaphore_mem>>) src(%100 : memref<1x2048xf32, #tpu.memory_space<any>>) dst(%101 : memref<1x2048xf32, #tpu.memory_space<vmem>>)
    %c6_i32_86 = arith.constant 6 : i32
    %c0_i32_87 = arith.constant 0 : i32
    %c0_i32_88 = arith.constant 0 : i32
    %104 = tpu.memref_slice %arg2[%c0_i32_87, %c0_i32_88] : memref<64x2048xf32, #tpu.memory_space<any>> -> memref<1x2048xf32, #tpu.memory_space<any>>
    %c6_i32_89 = arith.constant 6 : i32
    %c0_i32_90 = arith.constant 0 : i32
    %105 = tpu.memref_slice %arg8[%c6_i32_89, %c0_i32_90] : memref<16x2048xf32, #tpu.memory_space<vmem>> -> memref<1x2048xf32, #tpu.memory_space<vmem>>
    %106 = tpu.memref_slice %arg9[%c6_i32_86] : memref<16x!tpu.dma_semaphore, #tpu.memory_space<semaphore_mem>> -> memref<1x!tpu.dma_semaphore, #tpu.memory_space<semaphore_mem>>
    %107 = tpu.memref_squeeze %106 : memref<1x!tpu.dma_semaphore, #tpu.memory_space<semaphore_mem>> -> memref<!tpu.dma_semaphore, #tpu.memory_space<semaphore_mem>>
    tpu.wait_dma2 semaphore(%107 : memref<!tpu.dma_semaphore, #tpu.memory_space<semaphore_mem>>) src(%104 : memref<1x2048xf32, #tpu.memory_space<any>>) dst(%105 : memref<1x2048xf32, #tpu.memory_space<vmem>>)
    %c7_i32_91 = arith.constant 7 : i32
    %c0_i32_92 = arith.constant 0 : i32
    %c0_i32_93 = arith.constant 0 : i32
    %108 = tpu.memref_slice %arg2[%c0_i32_92, %c0_i32_93] : memref<64x2048xf32, #tpu.memory_space<any>> -> memref<1x2048xf32, #tpu.memory_space<any>>
    %c7_i32_94 = arith.constant 7 : i32
    %c0_i32_95 = arith.constant 0 : i32
    %109 = tpu.memref_slice %arg8[%c7_i32_94, %c0_i32_95] : memref<16x2048xf32, #tpu.memory_space<vmem>> -> memref<1x2048xf32, #tpu.memory_space<vmem>>
    %110 = tpu.memref_slice %arg9[%c7_i32_91] : memref<16x!tpu.dma_semaphore, #tpu.memory_space<semaphore_mem>> -> memref<1x!tpu.dma_semaphore, #tpu.memory_space<semaphore_mem>>
    %111 = tpu.memref_squeeze %110 : memref<1x!tpu.dma_semaphore, #tpu.memory_space<semaphore_mem>> -> memref<!tpu.dma_semaphore, #tpu.memory_space<semaphore_mem>>
    tpu.wait_dma2 semaphore(%111 : memref<!tpu.dma_semaphore, #tpu.memory_space<semaphore_mem>>) src(%108 : memref<1x2048xf32, #tpu.memory_space<any>>) dst(%109 : memref<1x2048xf32, #tpu.memory_space<vmem>>)
    %c8_i32_96 = arith.constant 8 : i32
    %c0_i32_97 = arith.constant 0 : i32
    %c0_i32_98 = arith.constant 0 : i32
    %112 = tpu.memref_slice %arg2[%c0_i32_97, %c0_i32_98] : memref<64x2048xf32, #tpu.memory_space<any>> -> memref<1x2048xf32, #tpu.memory_space<any>>
    %c8_i32_99 = arith.constant 8 : i32
    %c0_i32_100 = arith.constant 0 : i32
    %113 = tpu.memref_slice %arg8[%c8_i32_99, %c0_i32_100] : memref<16x2048xf32, #tpu.memory_space<vmem>> -> memref<1x2048xf32, #tpu.memory_space<vmem>>
    %114 = tpu.memref_slice %arg9[%c8_i32_96] : memref<16x!tpu.dma_semaphore, #tpu.memory_space<semaphore_mem>> -> memref<1x!tpu.dma_semaphore, #tpu.memory_space<semaphore_mem>>
    %115 = tpu.memref_squeeze %114 : memref<1x!tpu.dma_semaphore, #tpu.memory_space<semaphore_mem>> -> memref<!tpu.dma_semaphore, #tpu.memory_space<semaphore_mem>>
    tpu.wait_dma2 semaphore(%115 : memref<!tpu.dma_semaphore, #tpu.memory_space<semaphore_mem>>) src(%112 : memref<1x2048xf32, #tpu.memory_space<any>>) dst(%113 : memref<1x2048xf32, #tpu.memory_space<vmem>>)
    %c9_i32_101 = arith.constant 9 : i32
    %c0_i32_102 = arith.constant 0 : i32
    %c0_i32_103 = arith.constant 0 : i32
    %116 = tpu.memref_slice %arg2[%c0_i32_102, %c0_i32_103] : memref<64x2048xf32, #tpu.memory_space<any>> -> memref<1x2048xf32, #tpu.memory_space<any>>
    %c9_i32_104 = arith.constant 9 : i32
    %c0_i32_105 = arith.constant 0 : i32
    %117 = tpu.memref_slice %arg8[%c9_i32_104, %c0_i32_105] : memref<16x2048xf32, #tpu.memory_space<vmem>> -> memref<1x2048xf32, #tpu.memory_space<vmem>>
    %118 = tpu.memref_slice %arg9[%c9_i32_101] : memref<16x!tpu.dma_semaphore, #tpu.memory_space<semaphore_mem>> -> memref<1x!tpu.dma_semaphore, #tpu.memory_space<semaphore_mem>>
    %119 = tpu.memref_squeeze %118 : memref<1x!tpu.dma_semaphore, #tpu.memory_space<semaphore_mem>> -> memref<!tpu.dma_semaphore, #tpu.memory_space<semaphore_mem>>
    tpu.wait_dma2 semaphore(%119 : memref<!tpu.dma_semaphore, #tpu.memory_space<semaphore_mem>>) src(%116 : memref<1x2048xf32, #tpu.memory_space<any>>) dst(%117 : memref<1x2048xf32, #tpu.memory_space<vmem>>)
    %c10_i32_106 = arith.constant 10 : i32
    %c0_i32_107 = arith.constant 0 : i32
    %c0_i32_108 = arith.constant 0 : i32
    %120 = tpu.memref_slice %arg2[%c0_i32_107, %c0_i32_108] : memref<64x2048xf32, #tpu.memory_space<any>> -> memref<1x2048xf32, #tpu.memory_space<any>>
    %c10_i32_109 = arith.constant 10 : i32
    %c0_i32_110 = arith.constant 0 : i32
    %121 = tpu.memref_slice %arg8[%c10_i32_109, %c0_i32_110] : memref<16x2048xf32, #tpu.memory_space<vmem>> -> memref<1x2048xf32, #tpu.memory_space<vmem>>
    %122 = tpu.memref_slice %arg9[%c10_i32_106] : memref<16x!tpu.dma_semaphore, #tpu.memory_space<semaphore_mem>> -> memref<1x!tpu.dma_semaphore, #tpu.memory_space<semaphore_mem>>
    %123 = tpu.memref_squeeze %122 : memref<1x!tpu.dma_semaphore, #tpu.memory_space<semaphore_mem>> -> memref<!tpu.dma_semaphore, #tpu.memory_space<semaphore_mem>>
    tpu.wait_dma2 semaphore(%123 : memref<!tpu.dma_semaphore, #tpu.memory_space<semaphore_mem>>) src(%120 : memref<1x2048xf32, #tpu.memory_space<any>>) dst(%121 : memref<1x2048xf32, #tpu.memory_space<vmem>>)
    %c11_i32_111 = arith.constant 11 : i32
    %c0_i32_112 = arith.constant 0 : i32
    %c0_i32_113 = arith.constant 0 : i32
    %124 = tpu.memref_slice %arg2[%c0_i32_112, %c0_i32_113] : memref<64x2048xf32, #tpu.memory_space<any>> -> memref<1x2048xf32, #tpu.memory_space<any>>
    %c11_i32_114 = arith.constant 11 : i32
    %c0_i32_115 = arith.constant 0 : i32
    %125 = tpu.memref_slice %arg8[%c11_i32_114, %c0_i32_115] : memref<16x2048xf32, #tpu.memory_space<vmem>> -> memref<1x2048xf32, #tpu.memory_space<vmem>>
    %126 = tpu.memref_slice %arg9[%c11_i32_111] : memref<16x!tpu.dma_semaphore, #tpu.memory_space<semaphore_mem>> -> memref<1x!tpu.dma_semaphore, #tpu.memory_space<semaphore_mem>>
    %127 = tpu.memref_squeeze %126 : memref<1x!tpu.dma_semaphore, #tpu.memory_space<semaphore_mem>> -> memref<!tpu.dma_semaphore, #tpu.memory_space<semaphore_mem>>
    tpu.wait_dma2 semaphore(%127 : memref<!tpu.dma_semaphore, #tpu.memory_space<semaphore_mem>>) src(%124 : memref<1x2048xf32, #tpu.memory_space<any>>) dst(%125 : memref<1x2048xf32, #tpu.memory_space<vmem>>)
    %c12_i32_116 = arith.constant 12 : i32
    %c0_i32_117 = arith.constant 0 : i32
    %c0_i32_118 = arith.constant 0 : i32
    %128 = tpu.memref_slice %arg2[%c0_i32_117, %c0_i32_118] : memref<64x2048xf32, #tpu.memory_space<any>> -> memref<1x2048xf32, #tpu.memory_space<any>>
    %c12_i32_119 = arith.constant 12 : i32
    %c0_i32_120 = arith.constant 0 : i32
    %129 = tpu.memref_slice %arg8[%c12_i32_119, %c0_i32_120] : memref<16x2048xf32, #tpu.memory_space<vmem>> -> memref<1x2048xf32, #tpu.memory_space<vmem>>
    %130 = tpu.memref_slice %arg9[%c12_i32_116] : memref<16x!tpu.dma_semaphore, #tpu.memory_space<semaphore_mem>> -> memref<1x!tpu.dma_semaphore, #tpu.memory_space<semaphore_mem>>
    %131 = tpu.memref_squeeze %130 : memref<1x!tpu.dma_semaphore, #tpu.memory_space<semaphore_mem>> -> memref<!tpu.dma_semaphore, #tpu.memory_space<semaphore_mem>>
    tpu.wait_dma2 semaphore(%131 : memref<!tpu.dma_semaphore, #tpu.memory_space<semaphore_mem>>) src(%128 : memref<1x2048xf32, #tpu.memory_space<any>>) dst(%129 : memref<1x2048xf32, #tpu.memory_space<vmem>>)
    %c13_i32_121 = arith.constant 13 : i32
    %c0_i32_122 = arith.constant 0 : i32
    %c0_i32_123 = arith.constant 0 : i32
    %132 = tpu.memref_slice %arg2[%c0_i32_122, %c0_i32_123] : memref<64x2048xf32, #tpu.memory_space<any>> -> memref<1x2048xf32, #tpu.memory_space<any>>
    %c13_i32_124 = arith.constant 13 : i32
    %c0_i32_125 = arith.constant 0 : i32
    %133 = tpu.memref_slice %arg8[%c13_i32_124, %c0_i32_125] : memref<16x2048xf32, #tpu.memory_space<vmem>> -> memref<1x2048xf32, #tpu.memory_space<vmem>>
    %134 = tpu.memref_slice %arg9[%c13_i32_121] : memref<16x!tpu.dma_semaphore, #tpu.memory_space<semaphore_mem>> -> memref<1x!tpu.dma_semaphore, #tpu.memory_space<semaphore_mem>>
    %135 = tpu.memref_squeeze %134 : memref<1x!tpu.dma_semaphore, #tpu.memory_space<semaphore_mem>> -> memref<!tpu.dma_semaphore, #tpu.memory_space<semaphore_mem>>
    tpu.wait_dma2 semaphore(%135 : memref<!tpu.dma_semaphore, #tpu.memory_space<semaphore_mem>>) src(%132 : memref<1x2048xf32, #tpu.memory_space<any>>) dst(%133 : memref<1x2048xf32, #tpu.memory_space<vmem>>)
    %c14_i32_126 = arith.constant 14 : i32
    %c0_i32_127 = arith.constant 0 : i32
    %c0_i32_128 = arith.constant 0 : i32
    %136 = tpu.memref_slice %arg2[%c0_i32_127, %c0_i32_128] : memref<64x2048xf32, #tpu.memory_space<any>> -> memref<1x2048xf32, #tpu.memory_space<any>>
    %c14_i32_129 = arith.constant 14 : i32
    %c0_i32_130 = arith.constant 0 : i32
    %137 = tpu.memref_slice %arg8[%c14_i32_129, %c0_i32_130] : memref<16x2048xf32, #tpu.memory_space<vmem>> -> memref<1x2048xf32, #tpu.memory_space<vmem>>
    %138 = tpu.memref_slice %arg9[%c14_i32_126] : memref<16x!tpu.dma_semaphore, #tpu.memory_space<semaphore_mem>> -> memref<1x!tpu.dma_semaphore, #tpu.memory_space<semaphore_mem>>
    %139 = tpu.memref_squeeze %138 : memref<1x!tpu.dma_semaphore, #tpu.memory_space<semaphore_mem>> -> memref<!tpu.dma_semaphore, #tpu.memory_space<semaphore_mem>>
    tpu.wait_dma2 semaphore(%139 : memref<!tpu.dma_semaphore, #tpu.memory_space<semaphore_mem>>) src(%136 : memref<1x2048xf32, #tpu.memory_space<any>>) dst(%137 : memref<1x2048xf32, #tpu.memory_space<vmem>>)
    %c15_i32_131 = arith.constant 15 : i32
    %c0_i32_132 = arith.constant 0 : i32
    %c0_i32_133 = arith.constant 0 : i32
    %140 = tpu.memref_slice %arg2[%c0_i32_132, %c0_i32_133] : memref<64x2048xf32, #tpu.memory_space<any>> -> memref<1x2048xf32, #tpu.memory_space<any>>
    %c15_i32_134 = arith.constant 15 : i32
    %c0_i32_135 = arith.constant 0 : i32
    %141 = tpu.memref_slice %arg8[%c15_i32_134, %c0_i32_135] : memref<16x2048xf32, #tpu.memory_space<vmem>> -> memref<1x2048xf32, #tpu.memory_space<vmem>>
    %142 = tpu.memref_slice %arg9[%c15_i32_131] : memref<16x!tpu.dma_semaphore, #tpu.memory_space<semaphore_mem>> -> memref<1x!tpu.dma_semaphore, #tpu.memory_space<semaphore_mem>>
    %143 = tpu.memref_squeeze %142 : memref<1x!tpu.dma_semaphore, #tpu.memory_space<semaphore_mem>> -> memref<!tpu.dma_semaphore, #tpu.memory_space<semaphore_mem>>
    tpu.wait_dma2 semaphore(%143 : memref<!tpu.dma_semaphore, #tpu.memory_space<semaphore_mem>>) src(%140 : memref<1x2048xf32, #tpu.memory_space<any>>) dst(%141 : memref<1x2048xf32, #tpu.memory_space<vmem>>)
    %c0_136 = arith.constant 0 : index
    %c0_137 = arith.constant 0 : index
    %144 = vector.load %arg8[%c0_136, %c0_137] : memref<16x2048xf32, #tpu.memory_space<vmem>>, vector<16x2048xf32>
    %145 = arith.truncf %144 : vector<16x2048xf32> to vector<16x2048xbf16>
    %c0_138 = arith.constant 0 : index
    %c0_139 = arith.constant 0 : index
    %146 = vector.load %arg3[%c0_138, %c0_139] : memref<2048x32xbf16, #tpu.memory_space<vmem>>, vector<2048x32xbf16>
    %cst = arith.constant dense<0.000000e+00> : vector<16x32xf32>
    %147 = tpu.matmul %145, %146, %cst {dimension_numbers = #tpu.dot_dimension_numbers<[1], [0], [0], [1], [0, 0, 1, 1], [], []>} : vector<16x2048xbf16>, vector<2048x32xbf16>, vector<16x32xf32> -> vector<16x32xf32>
    %148 = vector.extract_strided_slice %147 {offsets = [0, 0], sizes = [8, 32], strides = [1, 1]} : vector<16x32xf32> to vector<8x32xf32>
    %149 = vector.extract_strided_slice %147 {offsets = [8, 0], sizes = [8, 32], strides = [1, 1]} : vector<16x32xf32> to vector<8x32xf32>
    %150 = arith.mulf %148, %148 : vector<8x32xf32>
    %cst_140 = arith.constant dense<0.000000e+00> : vector<8xf32>
    %151 = vector.multi_reduction <add>, %150, %cst_140 [1] : vector<8x32xf32> to vector<8xf32>
    %152 = vector.shape_cast %151 : vector<8xf32> to vector<8x1xf32>
    %153 = math.sqrt %152 : vector<8x1xf32>
    %154 = arith.mulf %149, %149 : vector<8x32xf32>
    %cst_141 = arith.constant dense<0.000000e+00> : vector<8xf32>
    %155 = vector.multi_reduction <add>, %154, %cst_141 [1] : vector<8x32xf32> to vector<8xf32>
    %156 = vector.shape_cast %155 : vector<8xf32> to vector<8x1xf32>
    %157 = math.sqrt %156 : vector<8x1xf32>
    %cst_142 = arith.constant 9.99999996E-13 : f32
    %158 = vector.broadcast %cst_142 : f32 to vector<8x1xf32>
    %159 = arith.maximumf %153, %158 : vector<8x1xf32>
    %160 = vector.broadcast %159 : vector<8x1xf32> to vector<8x32xf32>
    %161 = arith.divf %148, %160 : vector<8x32xf32>
    %cst_143 = arith.constant 9.99999996E-13 : f32
    %162 = vector.broadcast %cst_143 : f32 to vector<8x1xf32>
    %163 = arith.maximumf %157, %162 : vector<8x1xf32>
    %164 = vector.broadcast %163 : vector<8x1xf32> to vector<8x32xf32>
    %165 = arith.divf %149, %164 : vector<8x32xf32>
    %c0_144 = arith.constant 0 : index
    %c0_145 = arith.constant 0 : index
    %166 = vector.load %arg4[%c0_144, %c0_145] : memref<1x1xf32, #tpu.memory_space<vmem>>, vector<1x1xf32>
    %167 = math.exp %166 : vector<1x1xf32>
    %168 = vector.broadcast %167 : vector<1x1xf32> to vector<8x32xf32>
    %169 = arith.mulf %161, %168 : vector<8x32xf32>
    %cst_146 = arith.constant dense<0.000000e+00> : vector<8x8xf32>
    %170 = tpu.matmul %169, %165, %cst_146 {dimension_numbers = #tpu.dot_dimension_numbers<[1], [1], [0], [0], [0, 0, 1, 0], [], []>} : vector<8x32xf32>, vector<8x32xf32>, vector<8x8xf32> -> vector<8x8xf32>
    %171 = arith.mulf %169, %165 : vector<8x32xf32>
    %cst_147 = arith.constant dense<0.000000e+00> : vector<8xf32>
    %172 = vector.multi_reduction <add>, %171, %cst_147 [1] : vector<8x32xf32> to vector<8xf32>
    %173 = vector.shape_cast %172 : vector<8xf32> to vector<8x1xf32>
    %c0_148 = arith.constant 0 : index
    %c0_149 = arith.constant 0 : index
    %174 = vector.load %arg5[%c0_148, %c0_149] : memref<8x1xf32, #tpu.memory_space<vmem>>, vector<8x1xf32>
    %c0_150 = arith.constant 0 : index
    %c0_151 = arith.constant 0 : index
    %175 = vector.load %arg6[%c0_150, %c0_151] : memref<1x8xf32, #tpu.memory_space<vmem>>, vector<1x8xf32>
    %cst_152 = arith.constant dense<0.000000e+00> : vector<1xf32>
    %176 = vector.multi_reduction <add>, %174, %cst_152 [0] : vector<8x1xf32> to vector<1xf32>
    %177 = vector.shape_cast %176 : vector<1xf32> to vector<1x1xf32>
    %178 = arith.mulf %173, %174 : vector<8x1xf32>
    %cst_153 = arith.constant dense<0.000000e+00> : vector<1xf32>
    %179 = vector.multi_reduction <add>, %178, %cst_153 [0] : vector<8x1xf32> to vector<1xf32>
    %180 = vector.shape_cast %179 : vector<1xf32> to vector<1x1xf32>
    %cst_154 = arith.constant dense<0xFF800000> : vector<8xf32>
    %181 = vector.multi_reduction <maximumf>, %170, %cst_154 [1] : vector<8x8xf32> to vector<8xf32>
    %182 = vector.shape_cast %181 : vector<8xf32> to vector<8x1xf32>
    %183 = vector.broadcast %182 : vector<8x1xf32> to vector<8x8xf32>
    %184 = arith.subf %170, %183 : vector<8x8xf32>
    %185 = math.exp %184 : vector<8x8xf32>
    %cst_155 = arith.constant dense<0.000000e+00> : vector<8xf32>
    %186 = vector.multi_reduction <add>, %185, %cst_155 [1] : vector<8x8xf32> to vector<8xf32>
    %187 = vector.shape_cast %186 : vector<8xf32> to vector<8x1xf32>
    %188 = math.log %187 : vector<8x1xf32>
    %189 = arith.addf %182, %188 : vector<8x1xf32>
    %190 = arith.mulf %189, %174 : vector<8x1xf32>
    %cst_156 = arith.constant dense<0.000000e+00> : vector<1xf32>
    %191 = vector.multi_reduction <add>, %190, %cst_156 [0] : vector<8x1xf32> to vector<1xf32>
    %192 = vector.shape_cast %191 : vector<1xf32> to vector<1x1xf32>
    %193 = arith.subf %192, %180 : vector<1x1xf32>
    %cst_157 = arith.constant dense<0xFF800000> : vector<8xf32>
    %194 = vector.multi_reduction <maximumf>, %170, %cst_157 [0] : vector<8x8xf32> to vector<8xf32>
    %195 = vector.shape_cast %194 : vector<8xf32> to vector<1x8xf32>
    %196 = vector.broadcast %195 : vector<1x8xf32> to vector<8x8xf32>
    %197 = arith.subf %170, %196 : vector<8x8xf32>
    %198 = math.exp %197 : vector<8x8xf32>
    %cst_158 = arith.constant dense<0.000000e+00> : vector<8xf32>
    %199 = vector.multi_reduction <add>, %198, %cst_158 [0] : vector<8x8xf32> to vector<8xf32>
    %200 = vector.shape_cast %199 : vector<8xf32> to vector<1x8xf32>
    %201 = math.log %200 : vector<1x8xf32>
    %202 = arith.addf %195, %201 : vector<1x8xf32>
    %203 = arith.mulf %202, %175 : vector<1x8xf32>
    %cst_159 = arith.constant dense<0.000000e+00> : vector<1xf32>
    %204 = vector.multi_reduction <add>, %203, %cst_159 [1] : vector<1x8xf32> to vector<1xf32>
    %205 = vector.shape_cast %204 : vector<1xf32> to vector<1x1xf32>
    %206 = arith.subf %205, %180 : vector<1x1xf32>
    %207 = arith.addf %193, %206 : vector<1x1xf32>
    %cst_160 = arith.constant 5.000000e-01 : f32
    %208 = vector.broadcast %cst_160 : f32 to vector<1x1xf32>
    %209 = arith.mulf %208, %207 : vector<1x1xf32>
    %210 = arith.divf %209, %177 : vector<1x1xf32>
    %c0_161 = arith.constant 0 : index
    %c0_162 = arith.constant 0 : index
    %211 = vector.load %arg7[%c0_161, %c0_162] : memref<1x1xf32, #tpu.memory_space<vmem>>, vector<1x1xf32>
    tpu.vector_store %arg7[%c0_161, %c0_162], %210 {strides = array<i32>} : memref<1x1xf32, #tpu.memory_space<vmem>>, vector<1x1xf32>,
    return
  }
}

</mosaic_0001>

<bundles_post_ra>
// kernel: tpu_custom_call.1
= control target key start
LH: loop header
LB: loop body
LE: loop exit
PB: predicated region body
PF: predicated region fallthrough
CT: control target
= control target key end

     0   :  { %s5467_s0 = inlined_call_operand.vmem [shape: s32[8], index: 0, kind: input, shape index: {}]   ;;  %s5468_s1 = inlined_call_operand.vmem [shape: s32[8], index: 1, kind: input, shape index: {}]   ;;  %s5469_s2 = inlined_call_operand.vmem [shape: f32[64,2048], index: 2, kind: input, shape index: {}]   ;;  %s5470_s3 = inlined_call_operand.vmem [shape: bf16[2048,32], index: 3, kind: input, shape index: {}]   ;;  %s5471_s4 = inlined_call_operand.<no memory space> [shape: f32[1,1], index: 4, kind: input, shape index: {}]   ;;  %s5472_s5 = inlined_call_operand.vmem [shape: f32[8,1], index: 5, kind: input, shape index: {}]   ;;  %s5473_s6 = inlined_call_operand.vmem [shape: f32[1,8], index: 6, kind: input, shape index: {}]   ;;  %s5474_s7 = inlined_call_operand.hbm [shape: f32[1,1], index: 7, kind: output, shape index: {}]  }
   0x1   :  { %v12_v0 = vstv %s5471_s4 }
   0x2   :  { %13 = vst [vmem:[#allocation4] sm:$0x1] %v12_v0 }
   0x3   :  { %14 = vsyncpa [#allocation7], 0 }
   0x4   :  { %15 = vsyncpa [#allocation9], 0 }
   0x5   :  { %16 = vsyncpa [#allocation6], 0  ;;  %s23_s28 = sshll.u32 %s5467_s0, 4  ;;  %s33_s8 = sshll.u32 %s5468_s1, 4  ;;  %s24_s28 = int_to_ptr.vmem [resolvable:$true] %s23_s28  ;;  %s34_s8 = int_to_ptr.vmem [resolvable:$true] %s33_s8 }
   0x6   :  { %s4558_s9 = scalar_lea.vmem %s24_s28, 16  ;;  %p4563_p1 = scmp.lt.s32.totalorder %s24_s28, %s24_s28 }
   0x7   :  { %p4559_p0 = scmp.ne.s32.totalorder %s24_s28, %s4558_s9  ;;  %p4564_p2 = scmp.lt.s32.totalorder %s4558_s9, %s4558_s9 }
   0x9   :  { %p4565_p3 = por %p4564_p2, %p4563_p1 }
   0xb   :  { %p4566_p4 = pnand %p4565_p3, %p4559_p0 }
   0xd   :  { %4569 = shalt.err (!%p4566_p4)
}
   0xe   :  { %s4640_s4 = smov [#allocation5]   ;;  %s4570_s10 = scalar_lea.vmem %s34_s8, 16 }
   0xf   :  { %26 = dma.vmem_to_smem %s24_s28, 16, %s4640_s4, [#allocation7]  }
  0x10   :  { %p4571_p5 = scmp.ne.s32.totalorder %s34_s8, %s4570_s10  ;;  %p4575_p6 = scmp.lt.s32.totalorder %s34_s8, %s34_s8 }
  0x11   :  { %p4576_p7 = scmp.lt.s32.totalorder %s4570_s10, %s4570_s10 }
  0x13   :  { %p4577_p8 = por %p4576_p7, %p4575_p6 }
  0x15   :  { %p4578_p9 = pnand %p4577_p8, %p4571_p5 }
  0x17   :  { %4581 = shalt.err (!%p4578_p9)
}
  0x18   :  { %s4641_s0 = smov [#allocation8]  }
  0x19   :  { %36 = dma.vmem_to_smem %s34_s8, 16, %s4641_s0, [#allocation9]  }
  0x1a   :  { %4602 = dma.done.wait [#allocation7], 16  }
  0x1b   :  { %4603 = vsyncadd [#allocation7], 4294967280 }
  0x1c   :  { %4604 = dma.done.wait [#allocation9], 16  }
  0x1d   :  { %4605 = vsyncadd [#allocation9], 4294967280 }
  0x1e   :  { %51 = sfence }
  0x1f   :  { %s53_s1 = sld [smem:[#allocation5]] }
  0x20   :  { %s4695_s11 = sld [smem:[#allocation8]] }
  0x25   :  { %s55_s12 = sshrl.u32 %s53_s1, 3  ;;  %s56_s13 = sand.u32 7, %s53_s1  }
  0x26   :  { %s4043_s14 = sshll.u32 %s55_s12, 7 }
  0x27   :  { %s58_s15 = sadd.s32 %s4043_s14, %s56_s13 }
  0x28   :  { %s4700_s18 = scalar_lea.vmem %s5469_s2, %s58_s15 }
  0x29   :  { %v78_v1 = vld [vmem:[%s4700_s18] sm:$0x1]  ;;  %v80_v2 = vld [vmem:[%s4700_s18 + $0x8] sm:$0x1]  ;;  %v82_v3 = vld [vmem:[%s4700_s18 + $0x10] sm:$0x1] }
  0x2a   :  { %79 = vst [vmem:[#allocation2] sm:$0x1] %v78_v1  ;;  %81 = vst [vmem:[#allocation2 + $0x8] sm:$0x1] %v80_v2  ;;  %v84_v4 = vld [vmem:[%s4700_s18 + $0x18] sm:$0x1] }
  0x2b   :  { %83 = vst [vmem:[#allocation2 + $0x10] sm:$0x1] %v82_v3  ;;  %v86_v5 = vld [vmem:[%s4700_s18 + $0x20] sm:$0x1]  ;;  %v88_v6 = vld [vmem:[%s4700_s18 + $0x28] sm:$0x1] }
  0x2c   :  { %85 = vst [vmem:[#allocation2 + $0x18] sm:$0x1] %v84_v4  ;;  %87 = vst [vmem:[#allocation2 + $0x20] sm:$0x1] %v86_v5  ;;  %v90_v7 = vld [vmem:[%s4700_s18 + $0x30] sm:$0x1] }
  0x2d   :  { %89 = vst [vmem:[#allocation2 + $0x28] sm:$0x1] %v88_v6  ;;  %v92_v8 = vld [vmem:[%s4700_s18 + $0x38] sm:$0x1]  ;;  %v94_v9 = vld [vmem:[%s4700_s18 + $0x40] sm:$0x1] }
  0x2e   :  { %91 = vst [vmem:[#allocation2 + $0x30] sm:$0x1] %v90_v7  ;;  %93 = vst [vmem:[#allocation2 + $0x38] sm:$0x1] %v92_v8  ;;  %v96_v10 = vld [vmem:[%s4700_s18 + $0x48] sm:$0x1] }
  0x2f   :  { %95 = vst [vmem:[#allocation2 + $0x40] sm:$0x1] %v94_v9  ;;  %v98_v11 = vld [vmem:[%s4700_s18 + $0x50] sm:$0x1]  ;;  %v100_v12 = vld [vmem:[%s4700_s18 + $0x58] sm:$0x1] }
  0x30   :  { %97 = vst [vmem:[#allocation2 + $0x48] sm:$0x1] %v96_v10  ;;  %99 = vst [vmem:[#allocation2 + $0x50] sm:$0x1] %v98_v11  ;;  %v102_v13 = vld [vmem:[%s4700_s18 + $0x60] sm:$0x1] }
  0x31   :  { %101 = vst [vmem:[#allocation2 + $0x58] sm:$0x1] %v100_v12  ;;  %v104_v14 = vld [vmem:[%s4700_s18 + $0x68] sm:$0x1]  ;;  %v106_v15 = vld [vmem:[%s4700_s18 + $0x70] sm:$0x1] }
  0x32   :  { %103 = vst [vmem:[#allocation2 + $0x60] sm:$0x1] %v102_v13  ;;  %105 = vst [vmem:[#allocation2 + $0x68] sm:$0x1] %v104_v14  ;;  %v108_v16 = vld [vmem:[%s4700_s18 + $0x78] sm:$0x1] }
  0x33   :  { %107 = vst [vmem:[#allocation2 + $0x70] sm:$0x1] %v106_v15  ;;  %109 = vst [vmem:[#allocation2 + $0x78] sm:$0x1] %v108_v16 }
  0x34   :  { %173 = vsyncadd [#allocation3], 256  ;;  %s174_s19 = sshrl.u32 %s4695_s11, 3  ;;  %s175_s20 = sand.u32 7, %s4695_s11  }
  0x35   :  { %s4044_s21 = sshll.u32 %s174_s19, 7 }
  0x36   :  { %s177_s22 = sadd.s32 %s4044_s21, %s175_s20 }
  0x37   :  { %s4723_s25 = scalar_lea.vmem %s5469_s2, %s177_s22 }
  0x38   :  { %v199_v17 = vld [vmem:[%s4723_s25] sm:$0x1]  ;;  %v201_v18 = vld [vmem:[%s4723_s25 + $0x8] sm:$0x1]  ;;  %v203_v19 = vld [vmem:[%s4723_s25 + $0x10] sm:$0x1] }
  0x39   :  { %200 = vst [vmem:[#allocation2 + $0x80] sm:$0x1] %v199_v17  ;;  %202 = vst [vmem:[#allocation2 + $0x88] sm:$0x1] %v201_v18  ;;  %v205_v20 = vld [vmem:[%s4723_s25 + $0x18] sm:$0x1] }
  0x3a   :  { %204 = vst [vmem:[#allocation2 + $0x90] sm:$0x1] %v203_v19  ;;  %v207_v21 = vld [vmem:[%s4723_s25 + $0x20] sm:$0x1]  ;;  %v209_v22 = vld [vmem:[%s4723_s25 + $0x28] sm:$0x1] }
  0x3b   :  { %206 = vst [vmem:[#allocation2 + $0x98] sm:$0x1] %v205_v20  ;;  %208 = vst [vmem:[#allocation2 + $0xa0] sm:$0x1] %v207_v21  ;;  %v211_v23 = vld [vmem:[%s4723_s25 + $0x30] sm:$0x1] }
  0x3c   :  { %210 = vst [vmem:[#allocation2 + $0xa8] sm:$0x1] %v209_v22  ;;  %v213_v24 = vld [vmem:[%s4723_s25 + $0x38] sm:$0x1]  ;;  %v215_v25 = vld [vmem:[%s4723_s25 + $0x40] sm:$0x1] }
  0x3d   :  { %212 = vst [vmem:[#allocation2 + $0xb0] sm:$0x1] %v211_v23  ;;  %214 = vst [vmem:[#allocation2 + $0xb8] sm:$0x1] %v213_v24  ;;  %v217_v26 = vld [vmem:[%s4723_s25 + $0x48] sm:$0x1] }
  0x3e   :  { %216 = vst [vmem:[#allocation2 + $0xc0] sm:$0x1] %v215_v25  ;;  %v219_v27 = vld [vmem:[%s4723_s25 + $0x50] sm:$0x1]  ;;  %v221_v28 = vld [vmem:[%s4723_s25 + $0x58] sm:$0x1] }
  0x3f   :  { %218 = vst [vmem:[#allocation2 + $0xc8] sm:$0x1] %v217_v26  ;;  %220 = vst [vmem:[#allocation2 + $0xd0] sm:$0x1] %v219_v27  ;;  %v223_v29 = vld [vmem:[%s4723_s25 + $0x60] sm:$0x1] }
  0x40   :  { %222 = vst [vmem:[#allocation2 + $0xd8] sm:$0x1] %v221_v28  ;;  %v225_v30 = vld [vmem:[%s4723_s25 + $0x68] sm:$0x1]  ;;  %v227_v31 = vld [vmem:[%s4723_s25 + $0x70] sm:$0x1] }
  0x41   :  { %224 = vst [vmem:[#allocation2 + $0xe0] sm:$0x1] %v223_v29  ;;  %226 = vst [vmem:[#allocation2 + $0xe8] sm:$0x1] %v225_v30  ;;  %v229_v32 = vld [vmem:[%s4723_s25 + $0x78] sm:$0x1] }
  0x42   :  { %228 = vst [vmem:[#allocation2 + $0xf0] sm:$0x1] %v227_v31  ;;  %230 = vst [vmem:[#allocation2 + $0xf8] sm:$0x1] %v229_v32 }
  0x43   :  { %294 = vsyncadd [#allocation3 + $0x8], 256  ;;  %s4045_s26 = sld [smem:[#allocation5 + $0x1]] }
  0x44   :  { %s4741_s27 = sld [smem:[#allocation8 + $0x1]] }
  0x49   :  { %s297_s28 = sshrl.u32 %s4045_s26, 3  ;;  %s298_s29 = sand.u32 7, %s4045_s26  }
  0x4a   :  { %s4047_s30 = sshll.u32 %s297_s28, 7 }
  0x4b   :  { %s300_s8 = sadd.s32 %s4047_s30, %s298_s29 }
  0x4c   :  { %s4746_s10 = scalar_lea.vmem %s5469_s2, %s300_s8 }
  0x4d   :  { %v322_v33 = vld [vmem:[%s4746_s10] sm:$0x1]  ;;  %v324_v34 = vld [vmem:[%s4746_s10 + $0x8] sm:$0x1]  ;;  %v326_v35 = vld [vmem:[%s4746_s10 + $0x10] sm:$0x1] }
  0x4e   :  { %323 = vst [vmem:[#allocation2 + $0x1] sm:$0x1] %v322_v33  ;;  %325 = vst [vmem:[#allocation2 + $0x9] sm:$0x1] %v324_v34  ;;  %v328_v36 = vld [vmem:[%s4746_s10 + $0x18] sm:$0x1] }
  0x4f   :  { %327 = vst [vmem:[#allocation2 + $0x11] sm:$0x1] %v326_v35  ;;  %v330_v37 = vld [vmem:[%s4746_s10 + $0x20] sm:$0x1]  ;;  %v332_v38 = vld [vmem:[%s4746_s10 + $0x28] sm:$0x1] }
  0x50   :  { %329 = vst [vmem:[#allocation2 + $0x19] sm:$0x1] %v328_v36  ;;  %331 = vst [vmem:[#allocation2 + $0x21] sm:$0x1] %v330_v37  ;;  %v334_v39 = vld [vmem:[%s4746_s10 + $0x30] sm:$0x1] }
  0x51   :  { %333 = vst [vmem:[#allocation2 + $0x29] sm:$0x1] %v332_v38  ;;  %v336_v40 = vld [vmem:[%s4746_s10 + $0x38] sm:$0x1]  ;;  %v338_v41 = vld [vmem:[%s4746_s10 + $0x40] sm:$0x1] }
  0x52   :  { %335 = vst [vmem:[#allocation2 + $0x31] sm:$0x1] %v334_v39  ;;  %337 = vst [vmem:[#allocation2 + $0x39] sm:$0x1] %v336_v40  ;;  %v340_v42 = vld [vmem:[%s4746_s10 + $0x48] sm:$0x1] }
  0x53   :  { %339 = vst [vmem:[#allocation2 + $0x41] sm:$0x1] %v338_v41  ;;  %v342_v43 = vld [vmem:[%s4746_s10 + $0x50] sm:$0x1]  ;;  %v344_v44 = vld [vmem:[%s4746_s10 + $0x58] sm:$0x1] }
  0x54   :  { %341 = vst [vmem:[#allocation2 + $0x49] sm:$0x1] %v340_v42  ;;  %343 = vst [vmem:[#allocation2 + $0x51] sm:$0x1] %v342_v43  ;;  %v346_v45 = vld [vmem:[%s4746_s10 + $0x60] sm:$0x1] }
  0x55   :  { %345 = vst [vmem:[#allocation2 + $0x59] sm:$0x1] %v344_v44  ;;  %v348_v46 = vld [vmem:[%s4746_s10 + $0x68] sm:$0x1]  ;;  %v350_v47 = vld [vmem:[%s4746_s10 + $0x70] sm:$0x1] }
  0x56   :  { %347 = vst [vmem:[#allocation2 + $0x61] sm:$0x1] %v346_v45  ;;  %349 = vst [vmem:[#allocation2 + $0x69] sm:$0x1] %v348_v46  ;;  %v352_v48 = vld [vmem:[%s4746_s10 + $0x78] sm:$0x1] }
  0x57   :  { %351 = vst [vmem:[#allocation2 + $0x71] sm:$0x1] %v350_v47  ;;  %353 = vst [vmem:[#allocation2 + $0x79] sm:$0x1] %v352_v48 }
  0x58   :  { %417 = vsyncadd [#allocation3 + $0x1], 256  ;;  %s418_s0 = sshrl.u32 %s4741_s27, 3  ;;  %s419_s1 = sand.u32 7, %s4741_s27  }
  0x59   :  { %s4048_s11 = sshll.u32 %s418_s0, 7 }
  0x5a   :  { %s421_s12 = sadd.s32 %s4048_s11, %s419_s1 }
  0x5b   :  { %s4769_s15 = scalar_lea.vmem %s5469_s2, %s421_s12 }
  0x5c   :  { %v443_v49 = vld [vmem:[%s4769_s15] sm:$0x1]  ;;  %v445_v50 = vld [vmem:[%s4769_s15 + $0x8] sm:$0x1]  ;;  %v447_v51 = vld [vmem:[%s4769_s15 + $0x10] sm:$0x1] }
  0x5d   :  { %444 = vst [vmem:[#allocation2 + $0x81] sm:$0x1] %v443_v49  ;;  %446 = vst [vmem:[#allocation2 + $0x89] sm:$0x1] %v445_v50  ;;  %v449_v52 = vld [vmem:[%s4769_s15 + $0x18] sm:$0x1] }
  0x5e   :  { %448 = vst [vmem:[#allocation2 + $0x91] sm:$0x1] %v447_v51  ;;  %v451_v53 = vld [vmem:[%s4769_s15 + $0x20] sm:$0x1]  ;;  %v453_v54 = vld [vmem:[%s4769_s15 + $0x28] sm:$0x1] }
  0x5f   :  { %450 = vst [vmem:[#allocation2 + $0x99] sm:$0x1] %v449_v52  ;;  %452 = vst [vmem:[#allocation2 + $0xa1] sm:$0x1] %v451_v53  ;;  %v455_v55 = vld [vmem:[%s4769_s15 + $0x30] sm:$0x1] }
  0x60   :  { %454 = vst [vmem:[#allocation2 + $0xa9] sm:$0x1] %v453_v54  ;;  %v457_v56 = vld [vmem:[%s4769_s15 + $0x38] sm:$0x1]  ;;  %v459_v57 = vld [vmem:[%s4769_s15 + $0x40] sm:$0x1] }
  0x61   :  { %456 = vst [vmem:[#allocation2 + $0xb1] sm:$0x1] %v455_v55  ;;  %458 = vst [vmem:[#allocation2 + $0xb9] sm:$0x1] %v457_v56  ;;  %v461_v58 = vld [vmem:[%s4769_s15 + $0x48] sm:$0x1] }
  0x62   :  { %460 = vst [vmem:[#allocation2 + $0xc1] sm:$0x1] %v459_v57  ;;  %v463_v59 = vld [vmem:[%s4769_s15 + $0x50] sm:$0x1]  ;;  %v465_v60 = vld [vmem:[%s4769_s15 + $0x58] sm:$0x1] }
  0x63   :  { %462 = vst [vmem:[#allocation2 + $0xc9] sm:$0x1] %v461_v58  ;;  %464 = vst [vmem:[#allocation2 + $0xd1] sm:$0x1] %v463_v59  ;;  %v467_v61 = vld [vmem:[%s4769_s15 + $0x60] sm:$0x1] }
  0x64   :  { %466 = vst [vmem:[#allocation2 + $0xd9] sm:$0x1] %v465_v60  ;;  %v469_v62 = vld [vmem:[%s4769_s15 + $0x68] sm:$0x1]  ;;  %v471_v63 = vld [vmem:[%s4769_s15 + $0x70] sm:$0x1] }
  0x65   :  { %468 = vst [vmem:[#allocation2 + $0xe1] sm:$0x1] %v467_v61  ;;  %470 = vst [vmem:[#allocation2 + $0xe9] sm:$0x1] %v469_v62  ;;  %v473_v0 = vld [vmem:[%s4769_s15 + $0x78] sm:$0x1] }
  0x66   :  { %472 = vst [vmem:[#allocation2 + $0xf1] sm:$0x1] %v471_v63  ;;  %474 = vst [vmem:[#allocation2 + $0xf9] sm:$0x1] %v473_v0 }
  0x67   :  { %538 = vsyncadd [#allocation3 + $0x9], 256  ;;  %s4049_s16 = sld [smem:[#allocation5 + $0x2]] }
  0x68   :  { %s4787_s17 = sld [smem:[#allocation8 + $0x2]] }
  0x6d   :  { %s541_s18 = sshrl.u32 %s4049_s16, 3  ;;  %s542_s19 = sand.u32 7, %s4049_s16  }
  0x6e   :  { %s4051_s20 = sshll.u32 %s541_s18, 7 }
  0x6f   :  { %s544_s21 = sadd.s32 %s4051_s20, %s542_s19 }
  0x70   :  { %s4792_s24 = scalar_lea.vmem %s5469_s2, %s544_s21 }
  0x71   :  { %v566_v1 = vld [vmem:[%s4792_s24] sm:$0x1]  ;;  %v568_v2 = vld [vmem:[%s4792_s24 + $0x8] sm:$0x1]  ;;  %v570_v3 = vld [vmem:[%s4792_s24 + $0x10] sm:$0x1] }
  0x72   :  { %567 = vst [vmem:[#allocation2 + $0x2] sm:$0x1] %v566_v1  ;;  %569 = vst [vmem:[#allocation2 + $0xa] sm:$0x1] %v568_v2  ;;  %v572_v4 = vld [vmem:[%s4792_s24 + $0x18] sm:$0x1] }
  0x73   :  { %571 = vst [vmem:[#allocation2 + $0x12] sm:$0x1] %v570_v3  ;;  %v574_v5 = vld [vmem:[%s4792_s24 + $0x20] sm:$0x1]  ;;  %v576_v6 = vld [vmem:[%s4792_s24 + $0x28] sm:$0x1] }
  0x74   :  { %573 = vst [vmem:[#allocation2 + $0x1a] sm:$0x1] %v572_v4  ;;  %575 = vst [vmem:[#allocation2 + $0x22] sm:$0x1] %v574_v5  ;;  %v578_v7 = vld [vmem:[%s4792_s24 + $0x30] sm:$0x1] }
  0x75   :  { %577 = vst [vmem:[#allocation2 + $0x2a] sm:$0x1] %v576_v6  ;;  %v580_v8 = vld [vmem:[%s4792_s24 + $0x38] sm:$0x1]  ;;  %v582_v9 = vld [vmem:[%s4792_s24 + $0x40] sm:$0x1] }
  0x76   :  { %579 = vst [vmem:[#allocation2 + $0x32] sm:$0x1] %v578_v7  ;;  %581 = vst [vmem:[#allocation2 + $0x3a] sm:$0x1] %v580_v8  ;;  %v584_v10 = vld [vmem:[%s4792_s24 + $0x48] sm:$0x1] }
  0x77   :  { %583 = vst [vmem:[#allocation2 + $0x42] sm:$0x1] %v582_v9  ;;  %v586_v11 = vld [vmem:[%s4792_s24 + $0x50] sm:$0x1]  ;;  %v588_v12 = vld [vmem:[%s4792_s24 + $0x58] sm:$0x1] }
  0x78   :  { %585 = vst [vmem:[#allocation2 + $0x4a] sm:$0x1] %v584_v10  ;;  %587 = vst [vmem:[#allocation2 + $0x52] sm:$0x1] %v586_v11  ;;  %v590_v13 = vld [vmem:[%s4792_s24 + $0x60] sm:$0x1] }
  0x79   :  { %589 = vst [vmem:[#allocation2 + $0x5a] sm:$0x1] %v588_v12  ;;  %v592_v14 = vld [vmem:[%s4792_s24 + $0x68] sm:$0x1]  ;;  %v594_v15 = vld [vmem:[%s4792_s24 + $0x70] sm:$0x1] }
  0x7a   :  { %591 = vst [vmem:[#allocation2 + $0x62] sm:$0x1] %v590_v13  ;;  %593 = vst [vmem:[#allocation2 + $0x6a] sm:$0x1] %v592_v14  ;;  %v596_v16 = vld [vmem:[%s4792_s24 + $0x78] sm:$0x1] }
  0x7b   :  { %595 = vst [vmem:[#allocation2 + $0x72] sm:$0x1] %v594_v15  ;;  %597 = vst [vmem:[#allocation2 + $0x7a] sm:$0x1] %v596_v16 }
  0x7c   :  { %661 = vsyncadd [#allocation3 + $0x2], 256  ;;  %s662_s25 = sshrl.u32 %s4787_s17, 3  ;;  %s663_s26 = sand.u32 7, %s4787_s17  }
  0x7d   :  { %s4052_s27 = sshll.u32 %s662_s25, 7 }
  0x7e   :  { %s665_s28 = sadd.s32 %s4052_s27, %s663_s26 }
  0x7f   :  { %s4815_s8 = scalar_lea.vmem %s5469_s2, %s665_s28 }
  0x80   :  { %v687_v17 = vld [vmem:[%s4815_s8] sm:$0x1]  ;;  %v689_v18 = vld [vmem:[%s4815_s8 + $0x8] sm:$0x1]  ;;  %v691_v19 = vld [vmem:[%s4815_s8 + $0x10] sm:$0x1] }
  0x81   :  { %688 = vst [vmem:[#allocation2 + $0x82] sm:$0x1] %v687_v17  ;;  %690 = vst [vmem:[#allocation2 + $0x8a] sm:$0x1] %v689_v18  ;;  %v693_v20 = vld [vmem:[%s4815_s8 + $0x18] sm:$0x1] }
  0x82   :  { %692 = vst [vmem:[#allocation2 + $0x92] sm:$0x1] %v691_v19  ;;  %v695_v21 = vld [vmem:[%s4815_s8 + $0x20] sm:$0x1]  ;;  %v697_v22 = vld [vmem:[%s4815_s8 + $0x28] sm:$0x1] }
  0x83   :  { %694 = vst [vmem:[#allocation2 + $0x9a] sm:$0x1] %v693_v20  ;;  %696 = vst [vmem:[#allocation2 + $0xa2] sm:$0x1] %v695_v21  ;;  %v699_v23 = vld [vmem:[%s4815_s8 + $0x30] sm:$0x1] }
  0x84   :  { %698 = vst [vmem:[#allocation2 + $0xaa] sm:$0x1] %v697_v22  ;;  %v701_v24 = vld [vmem:[%s4815_s8 + $0x38] sm:$0x1]  ;;  %v703_v25 = vld [vmem:[%s4815_s8 + $0x40] sm:$0x1] }
  0x85   :  { %700 = vst [vmem:[#allocation2 + $0xb2] sm:$0x1] %v699_v23  ;;  %702 = vst [vmem:[#allocation2 + $0xba] sm:$0x1] %v701_v24  ;;  %v705_v26 = vld [vmem:[%s4815_s8 + $0x48] sm:$0x1] }
  0x86   :  { %704 = vst [vmem:[#allocation2 + $0xc2] sm:$0x1] %v703_v25  ;;  %v707_v27 = vld [vmem:[%s4815_s8 + $0x50] sm:$0x1]  ;;  %v709_v28 = vld [vmem:[%s4815_s8 + $0x58] sm:$0x1] }
  0x87   :  { %706 = vst [vmem:[#allocation2 + $0xca] sm:$0x1] %v705_v26  ;;  %708 = vst [vmem:[#allocation2 + $0xd2] sm:$0x1] %v707_v27  ;;  %v711_v29 = vld [vmem:[%s4815_s8 + $0x60] sm:$0x1] }
  0x88   :  { %710 = vst [vmem:[#allocation2 + $0xda] sm:$0x1] %v709_v28  ;;  %v713_v30 = vld [vmem:[%s4815_s8 + $0x68] sm:$0x1]  ;;  %v715_v31 = vld [vmem:[%s4815_s8 + $0x70] sm:$0x1] }
  0x89   :  { %712 = vst [vmem:[#allocation2 + $0xe2] sm:$0x1] %v711_v29  ;;  %714 = vst [vmem:[#allocation2 + $0xea] sm:$0x1] %v713_v30  ;;  %v717_v32 = vld [vmem:[%s4815_s8 + $0x78] sm:$0x1] }
  0x8a   :  { %716 = vst [vmem:[#allocation2 + $0xf2] sm:$0x1] %v715_v31  ;;  %718 = vst [vmem:[#allocation2 + $0xfa] sm:$0x1] %v717_v32 }
  0x8b   :  { %782 = vsyncadd [#allocation3 + $0xa], 256  ;;  %s4053_s9 = sld [smem:[#allocation5 + $0x3]] }
  0x8c   :  { %s4833_s4 = sld [smem:[#allocation8 + $0x3]] }
  0x91   :  { %s785_s10 = sshrl.u32 %s4053_s9, 3  ;;  %s786_s0 = sand.u32 7, %s4053_s9  }
  0x92   :  { %s4055_s1 = sshll.u32 %s785_s10, 7 }
  0x93   :  { %s788_s11 = sadd.s32 %s4055_s1, %s786_s0 }
  0x94   :  { %s4838_s14 = scalar_lea.vmem %s5469_s2, %s788_s11 }
  0x95   :  { %v810_v33 = vld [vmem:[%s4838_s14] sm:$0x1]  ;;  %v812_v34 = vld [vmem:[%s4838_s14 + $0x8] sm:$0x1]  ;;  %v814_v35 = vld [vmem:[%s4838_s14 + $0x10] sm:$0x1] }
  0x96   :  { %811 = vst [vmem:[#allocation2 + $0x3] sm:$0x1] %v810_v33  ;;  %813 = vst [vmem:[#allocation2 + $0xb] sm:$0x1] %v812_v34  ;;  %v816_v36 = vld [vmem:[%s4838_s14 + $0x18] sm:$0x1] }
  0x97   :  { %815 = vst [vmem:[#allocation2 + $0x13] sm:$0x1] %v814_v35  ;;  %v818_v37 = vld [vmem:[%s4838_s14 + $0x20] sm:$0x1]  ;;  %v820_v38 = vld [vmem:[%s4838_s14 + $0x28] sm:$0x1] }
  0x98   :  { %817 = vst [vmem:[#allocation2 + $0x1b] sm:$0x1] %v816_v36  ;;  %819 = vst [vmem:[#allocation2 + $0x23] sm:$0x1] %v818_v37  ;;  %v822_v39 = vld [vmem:[%s4838_s14 + $0x30] sm:$0x1] }
  0x99   :  { %821 = vst [vmem:[#allocation2 + $0x2b] sm:$0x1] %v820_v38  ;;  %v824_v40 = vld [vmem:[%s4838_s14 + $0x38] sm:$0x1]  ;;  %v826_v41 = vld [vmem:[%s4838_s14 + $0x40] sm:$0x1] }
  0x9a   :  { %823 = vst [vmem:[#allocation2 + $0x33] sm:$0x1] %v822_v39  ;;  %825 = vst [vmem:[#allocation2 + $0x3b] sm:$0x1] %v824_v40  ;;  %v828_v42 = vld [vmem:[%s4838_s14 + $0x48] sm:$0x1] }
  0x9b   :  { %827 = vst [vmem:[#allocation2 + $0x43] sm:$0x1] %v826_v41  ;;  %v830_v43 = vld [vmem:[%s4838_s14 + $0x50] sm:$0x1]  ;;  %v832_v44 = vld [vmem:[%s4838_s14 + $0x58] sm:$0x1] }
  0x9c   :  { %829 = vst [vmem:[#allocation2 + $0x4b] sm:$0x1] %v828_v42  ;;  %831 = vst [vmem:[#allocation2 + $0x53] sm:$0x1] %v830_v43  ;;  %v834_v45 = vld [vmem:[%s4838_s14 + $0x60] sm:$0x1] }
  0x9d   :  { %833 = vst [vmem:[#allocation2 + $0x5b] sm:$0x1] %v832_v44  ;;  %v836_v46 = vld [vmem:[%s4838_s14 + $0x68] sm:$0x1]  ;;  %v838_v47 = vld [vmem:[%s4838_s14 + $0x70] sm:$0x1] }
  0x9e   :  { %835 = vst [vmem:[#allocation2 + $0x63] sm:$0x1] %v834_v45  ;;  %837 = vst [vmem:[#allocation2 + $0x6b] sm:$0x1] %v836_v46  ;;  %v840_v48 = vld [vmem:[%s4838_s14 + $0x78] sm:$0x1] }
  0x9f   :  { %839 = vst [vmem:[#allocation2 + $0x73] sm:$0x1] %v838_v47  ;;  %841 = vst [vmem:[#allocation2 + $0x7b] sm:$0x1] %v840_v48 }
  0xa0   :  { %905 = vsyncadd [#allocation3 + $0x3], 256  ;;  %s906_s15 = sshrl.u32 %s4833_s4, 3  ;;  %s907_s16 = sand.u32 7, %s4833_s4  }
  0xa1   :  { %s4056_s17 = sshll.u32 %s906_s15, 7 }
  0xa2   :  { %s909_s18 = sadd.s32 %s4056_s17, %s907_s16 }
  0xa3   :  { %s4861_s21 = scalar_lea.vmem %s5469_s2, %s909_s18 }
  0xa4   :  { %v931_v49 = vld [vmem:[%s4861_s21] sm:$0x1]  ;;  %v933_v50 = vld [vmem:[%s4861_s21 + $0x8] sm:$0x1]  ;;  %v935_v51 = vld [vmem:[%s4861_s21 + $0x10] sm:$0x1] }
  0xa5   :  { %932 = vst [vmem:[#allocation2 + $0x83] sm:$0x1] %v931_v49  ;;  %934 = vst [vmem:[#allocation2 + $0x8b] sm:$0x1] %v933_v50  ;;  %v937_v52 = vld [vmem:[%s4861_s21 + $0x18] sm:$0x1] }
  0xa6   :  { %936 = vst [vmem:[#allocation2 + $0x93] sm:$0x1] %v935_v51  ;;  %v939_v53 = vld [vmem:[%s4861_s21 + $0x20] sm:$0x1]  ;;  %v941_v54 = vld [vmem:[%s4861_s21 + $0x28] sm:$0x1] }
  0xa7   :  { %938 = vst [vmem:[#allocation2 + $0x9b] sm:$0x1] %v937_v52  ;;  %940 = vst [vmem:[#allocation2 + $0xa3] sm:$0x1] %v939_v53  ;;  %v943_v55 = vld [vmem:[%s4861_s21 + $0x30] sm:$0x1] }
  0xa8   :  { %942 = vst [vmem:[#allocation2 + $0xab] sm:$0x1] %v941_v54  ;;  %v945_v56 = vld [vmem:[%s4861_s21 + $0x38] sm:$0x1]  ;;  %v947_v57 = vld [vmem:[%s4861_s21 + $0x40] sm:$0x1] }
  0xa9   :  { %944 = vst [vmem:[#allocation2 + $0xb3] sm:$0x1] %v943_v55  ;;  %946 = vst [vmem:[#allocation2 + $0xbb] sm:$0x1] %v945_v56  ;;  %v949_v58 = vld [vmem:[%s4861_s21 + $0x48] sm:$0x1] }
  0xaa   :  { %948 = vst [vmem:[#allocation2 + $0xc3] sm:$0x1] %v947_v57  ;;  %v951_v59 = vld [vmem:[%s4861_s21 + $0x50] sm:$0x1]  ;;  %v953_v60 = vld [vmem:[%s4861_s21 + $0x58] sm:$0x1] }
  0xab   :  { %950 = vst [vmem:[#allocation2 + $0xcb] sm:$0x1] %v949_v58  ;;  %952 = vst [vmem:[#allocation2 + $0xd3] sm:$0x1] %v951_v59  ;;  %v955_v61 = vld [vmem:[%s4861_s21 + $0x60] sm:$0x1] }
  0xac   :  { %954 = vst [vmem:[#allocation2 + $0xdb] sm:$0x1] %v953_v60  ;;  %v957_v62 = vld [vmem:[%s4861_s21 + $0x68] sm:$0x1]  ;;  %v959_v63 = vld [vmem:[%s4861_s21 + $0x70] sm:$0x1] }
  0xad   :  { %956 = vst [vmem:[#allocation2 + $0xe3] sm:$0x1] %v955_v61  ;;  %958 = vst [vmem:[#allocation2 + $0xeb] sm:$0x1] %v957_v62  ;;  %v961_v0 = vld [vmem:[%s4861_s21 + $0x78] sm:$0x1] }
  0xae   :  { %960 = vst [vmem:[#allocation2 + $0xf3] sm:$0x1] %v959_v63  ;;  %962 = vst [vmem:[#allocation2 + $0xfb] sm:$0x1] %v961_v0 }
  0xaf   :  { %1026 = vsyncadd [#allocation3 + $0xb], 256  ;;  %s4057_s22 = sld [smem:[#allocation5 + $0x4]] }
  0xb0   :  { %s4879_s23 = sld [smem:[#allocation8 + $0x4]] }
  0xb5   :  { %s1029_s24 = sshrl.u32 %s4057_s22, 3  ;;  %s1030_s25 = sand.u32 7, %s4057_s22  }
  0xb6   :  { %s4059_s26 = sshll.u32 %s1029_s24, 7 }
  0xb7   :  { %s1032_s27 = sadd.s32 %s4059_s26, %s1030_s25 }
  0xb8   :  { %s4884_s30 = scalar_lea.vmem %s5469_s2, %s1032_s27 }
  0xb9   :  { %v1054_v1 = vld [vmem:[%s4884_s30] sm:$0x1]  ;;  %v1056_v2 = vld [vmem:[%s4884_s30 + $0x8] sm:$0x1]  ;;  %v1058_v3 = vld [vmem:[%s4884_s30 + $0x10] sm:$0x1] }
  0xba   :  { %1055 = vst [vmem:[#allocation2 + $0x4] sm:$0x1] %v1054_v1  ;;  %1057 = vst [vmem:[#allocation2 + $0xc] sm:$0x1] %v1056_v2  ;;  %v1060_v4 = vld [vmem:[%s4884_s30 + $0x18] sm:$0x1] }
  0xbb   :  { %1059 = vst [vmem:[#allocation2 + $0x14] sm:$0x1] %v1058_v3  ;;  %v1062_v5 = vld [vmem:[%s4884_s30 + $0x20] sm:$0x1]  ;;  %v1064_v6 = vld [vmem:[%s4884_s30 + $0x28] sm:$0x1] }
  0xbc   :  { %1061 = vst [vmem:[#allocation2 + $0x1c] sm:$0x1] %v1060_v4  ;;  %1063 = vst [vmem:[#allocation2 + $0x24] sm:$0x1] %v1062_v5  ;;  %v1066_v7 = vld [vmem:[%s4884_s30 + $0x30] sm:$0x1] }
  0xbd   :  { %1065 = vst [vmem:[#allocation2 + $0x2c] sm:$0x1] %v1064_v6  ;;  %v1068_v8 = vld [vmem:[%s4884_s30 + $0x38] sm:$0x1]  ;;  %v1070_v9 = vld [vmem:[%s4884_s30 + $0x40] sm:$0x1] }
  0xbe   :  { %1067 = vst [vmem:[#allocation2 + $0x34] sm:$0x1] %v1066_v7  ;;  %1069 = vst [vmem:[#allocation2 + $0x3c] sm:$0x1] %v1068_v8  ;;  %v1072_v10 = vld [vmem:[%s4884_s30 + $0x48] sm:$0x1] }
  0xbf   :  { %1071 = vst [vmem:[#allocation2 + $0x44] sm:$0x1] %v1070_v9  ;;  %v1074_v11 = vld [vmem:[%s4884_s30 + $0x50] sm:$0x1]  ;;  %v1076_v12 = vld [vmem:[%s4884_s30 + $0x58] sm:$0x1] }
  0xc0   :  { %1073 = vst [vmem:[#allocation2 + $0x4c] sm:$0x1] %v1072_v10  ;;  %1075 = vst [vmem:[#allocation2 + $0x54] sm:$0x1] %v1074_v11  ;;  %v1078_v13 = vld [vmem:[%s4884_s30 + $0x60] sm:$0x1] }
  0xc1   :  { %1077 = vst [vmem:[#allocation2 + $0x5c] sm:$0x1] %v1076_v12  ;;  %v1080_v14 = vld [vmem:[%s4884_s30 + $0x68] sm:$0x1]  ;;  %v1082_v15 = vld [vmem:[%s4884_s30 + $0x70] sm:$0x1] }
  0xc2   :  { %1079 = vst [vmem:[#allocation2 + $0x64] sm:$0x1] %v1078_v13  ;;  %1081 = vst [vmem:[#allocation2 + $0x6c] sm:$0x1] %v1080_v14  ;;  %v1084_v16 = vld [vmem:[%s4884_s30 + $0x78] sm:$0x1] }
  0xc3   :  { %1083 = vst [vmem:[#allocation2 + $0x74] sm:$0x1] %v1082_v15  ;;  %1085 = vst [vmem:[#allocation2 + $0x7c] sm:$0x1] %v1084_v16 }
  0xc4   :  { %1149 = vsyncadd [#allocation3 + $0x4], 256  ;;  %s1150_s8 = sshrl.u32 %s4879_s23, 3  ;;  %s1151_s9 = sand.u32 7, %s4879_s23  }
  0xc5   :  { %s4060_s4 = sshll.u32 %s1150_s8, 7 }
  0xc6   :  { %s1153_s10 = sadd.s32 %s4060_s4, %s1151_s9 }
  0xc7   :  { %s4907_s11 = scalar_lea.vmem %s5469_s2, %s1153_s10 }
  0xc8   :  { %v1175_v17 = vld [vmem:[%s4907_s11] sm:$0x1]  ;;  %v1177_v18 = vld [vmem:[%s4907_s11 + $0x8] sm:$0x1]  ;;  %v1179_v19 = vld [vmem:[%s4907_s11 + $0x10] sm:$0x1] }
  0xc9   :  { %1176 = vst [vmem:[#allocation2 + $0x84] sm:$0x1] %v1175_v17  ;;  %1178 = vst [vmem:[#allocation2 + $0x8c] sm:$0x1] %v1177_v18  ;;  %v1181_v20 = vld [vmem:[%s4907_s11 + $0x18] sm:$0x1] }
  0xca   :  { %1180 = vst [vmem:[#allocation2 + $0x94] sm:$0x1] %v1179_v19  ;;  %v1183_v21 = vld [vmem:[%s4907_s11 + $0x20] sm:$0x1]  ;;  %v1185_v22 = vld [vmem:[%s4907_s11 + $0x28] sm:$0x1] }
  0xcb   :  { %1182 = vst [vmem:[#allocation2 + $0x9c] sm:$0x1] %v1181_v20  ;;  %1184 = vst [vmem:[#allocation2 + $0xa4] sm:$0x1] %v1183_v21  ;;  %v1187_v23 = vld [vmem:[%s4907_s11 + $0x30] sm:$0x1] }
  0xcc   :  { %1186 = vst [vmem:[#allocation2 + $0xac] sm:$0x1] %v1185_v22  ;;  %v1189_v24 = vld [vmem:[%s4907_s11 + $0x38] sm:$0x1]  ;;  %v1191_v25 = vld [vmem:[%s4907_s11 + $0x40] sm:$0x1] }
  0xcd   :  { %1188 = vst [vmem:[#allocation2 + $0xb4] sm:$0x1] %v1187_v23  ;;  %1190 = vst [vmem:[#allocation2 + $0xbc] sm:$0x1] %v1189_v24  ;;  %v1193_v26 = vld [vmem:[%s4907_s11 + $0x48] sm:$0x1] }
  0xce   :  { %1192 = vst [vmem:[#allocation2 + $0xc4] sm:$0x1] %v1191_v25  ;;  %v1195_v27 = vld [vmem:[%s4907_s11 + $0x50] sm:$0x1]  ;;  %v1197_v28 = vld [vmem:[%s4907_s11 + $0x58] sm:$0x1] }
  0xcf   :  { %1194 = vst [vmem:[#allocation2 + $0xcc] sm:$0x1] %v1193_v26  ;;  %1196 = vst [vmem:[#allocation2 + $0xd4] sm:$0x1] %v1195_v27  ;;  %v1199_v29 = vld [vmem:[%s4907_s11 + $0x60] sm:$0x1] }
  0xd0   :  { %1198 = vst [vmem:[#allocation2 + $0xdc] sm:$0x1] %v1197_v28  ;;  %v1201_v30 = vld [vmem:[%s4907_s11 + $0x68] sm:$0x1]  ;;  %v1203_v31 = vld [vmem:[%s4907_s11 + $0x70] sm:$0x1] }
  0xd1   :  { %1200 = vst [vmem:[#allocation2 + $0xe4] sm:$0x1] %v1199_v29  ;;  %1202 = vst [vmem:[#allocation2 + $0xec] sm:$0x1] %v1201_v30  ;;  %v1205_v32 = vld [vmem:[%s4907_s11 + $0x78] sm:$0x1] }
  0xd2   :  { %1204 = vst [vmem:[#allocation2 + $0xf4] sm:$0x1] %v1203_v31  ;;  %1206 = vst [vmem:[#allocation2 + $0xfc] sm:$0x1] %v1205_v32 }
  0xd3   :  { %1270 = vsyncadd [#allocation3 + $0xc], 256  ;;  %s4061_s12 = sld [smem:[#allocation5 + $0x5]] }
  0xd4   :  { %s4925_s13 = sld [smem:[#allocation8 + $0x5]] }
  0xd9   :  { %s1273_s14 = sshrl.u32 %s4061_s12, 3  ;;  %s1274_s15 = sand.u32 7, %s4061_s12  }
  0xda   :  { %s4063_s16 = sshll.u32 %s1273_s14, 7 }
  0xdb   :  { %s1276_s17 = sadd.s32 %s4063_s16, %s1274_s15 }
  0xdc   :  { %s4930_s20 = scalar_lea.vmem %s5469_s2, %s1276_s17 }
  0xdd   :  { %v1298_v33 = vld [vmem:[%s4930_s20] sm:$0x1]  ;;  %v1300_v34 = vld [vmem:[%s4930_s20 + $0x8] sm:$0x1]  ;;  %v1302_v35 = vld [vmem:[%s4930_s20 + $0x10] sm:$0x1] }
  0xde   :  { %1299 = vst [vmem:[#allocation2 + $0x5] sm:$0x1] %v1298_v33  ;;  %1301 = vst [vmem:[#allocation2 + $0xd] sm:$0x1] %v1300_v34  ;;  %v1304_v36 = vld [vmem:[%s4930_s20 + $0x18] sm:$0x1] }
  0xdf   :  { %1303 = vst [vmem:[#allocation2 + $0x15] sm:$0x1] %v1302_v35  ;;  %v1306_v37 = vld [vmem:[%s4930_s20 + $0x20] sm:$0x1]  ;;  %v1308_v38 = vld [vmem:[%s4930_s20 + $0x28] sm:$0x1] }
  0xe0   :  { %1305 = vst [vmem:[#allocation2 + $0x1d] sm:$0x1] %v1304_v36  ;;  %1307 = vst [vmem:[#allocation2 + $0x25] sm:$0x1] %v1306_v37  ;;  %v1310_v39 = vld [vmem:[%s4930_s20 + $0x30] sm:$0x1] }
  0xe1   :  { %1309 = vst [vmem:[#allocation2 + $0x2d] sm:$0x1] %v1308_v38  ;;  %v1312_v40 = vld [vmem:[%s4930_s20 + $0x38] sm:$0x1]  ;;  %v1314_v41 = vld [vmem:[%s4930_s20 + $0x40] sm:$0x1] }
  0xe2   :  { %1311 = vst [vmem:[#allocation2 + $0x35] sm:$0x1] %v1310_v39  ;;  %1313 = vst [vmem:[#allocation2 + $0x3d] sm:$0x1] %v1312_v40  ;;  %v1316_v42 = vld [vmem:[%s4930_s20 + $0x48] sm:$0x1] }
  0xe3   :  { %1315 = vst [vmem:[#allocation2 + $0x45] sm:$0x1] %v1314_v41  ;;  %v1318_v43 = vld [vmem:[%s4930_s20 + $0x50] sm:$0x1]  ;;  %v1320_v44 = vld [vmem:[%s4930_s20 + $0x58] sm:$0x1] }
  0xe4   :  { %1317 = vst [vmem:[#allocation2 + $0x4d] sm:$0x1] %v1316_v42  ;;  %1319 = vst [vmem:[#allocation2 + $0x55] sm:$0x1] %v1318_v43  ;;  %v1322_v45 = vld [vmem:[%s4930_s20 + $0x60] sm:$0x1] }
  0xe5   :  { %1321 = vst [vmem:[#allocation2 + $0x5d] sm:$0x1] %v1320_v44  ;;  %v1324_v46 = vld [vmem:[%s4930_s20 + $0x68] sm:$0x1]  ;;  %v1326_v47 = vld [vmem:[%s4930_s20 + $0x70] sm:$0x1] }
  0xe6   :  { %1323 = vst [vmem:[#allocation2 + $0x65] sm:$0x1] %v1322_v45  ;;  %1325 = vst [vmem:[#allocation2 + $0x6d] sm:$0x1] %v1324_v46  ;;  %v1328_v48 = vld [vmem:[%s4930_s20 + $0x78] sm:$0x1] }
  0xe7   :  { %1327 = vst [vmem:[#allocation2 + $0x75] sm:$0x1] %v1326_v47  ;;  %1329 = vst [vmem:[#allocation2 + $0x7d] sm:$0x1] %v1328_v48 }
  0xe8   :  { %1393 = vsyncadd [#allocation3 + $0x5], 256  ;;  %s1394_s21 = sshrl.u32 %s4925_s13, 3  ;;  %s1395_s22 = sand.u32 7, %s4925_s13  }
  0xe9   :  { %s4064_s23 = sshll.u32 %s1394_s21, 7 }
  0xea   :  { %s1397_s24 = sadd.s32 %s4064_s23, %s1395_s22 }
  0xeb   :  { %s4953_s27 = scalar_lea.vmem %s5469_s2, %s1397_s24 }
  0xec   :  { %v1419_v49 = vld [vmem:[%s4953_s27] sm:$0x1]  ;;  %v1421_v50 = vld [vmem:[%s4953_s27 + $0x8] sm:$0x1]  ;;  %v1423_v51 = vld [vmem:[%s4953_s27 + $0x10] sm:$0x1] }
  0xed   :  { %1420 = vst [vmem:[#allocation2 + $0x85] sm:$0x1] %v1419_v49  ;;  %1422 = vst [vmem:[#allocation2 + $0x8d] sm:$0x1] %v1421_v50  ;;  %v1425_v52 = vld [vmem:[%s4953_s27 + $0x18] sm:$0x1] }
  0xee   :  { %1424 = vst [vmem:[#allocation2 + $0x95] sm:$0x1] %v1423_v51  ;;  %v1427_v53 = vld [vmem:[%s4953_s27 + $0x20] sm:$0x1]  ;;  %v1429_v54 = vld [vmem:[%s4953_s27 + $0x28] sm:$0x1] }
  0xef   :  { %1426 = vst [vmem:[#allocation2 + $0x9d] sm:$0x1] %v1425_v52  ;;  %1428 = vst [vmem:[#allocation2 + $0xa5] sm:$0x1] %v1427_v53  ;;  %v1431_v55 = vld [vmem:[%s4953_s27 + $0x30] sm:$0x1] }
  0xf0   :  { %1430 = vst [vmem:[#allocation2 + $0xad] sm:$0x1] %v1429_v54  ;;  %v1433_v56 = vld [vmem:[%s4953_s27 + $0x38] sm:$0x1]  ;;  %v1435_v57 = vld [vmem:[%s4953_s27 + $0x40] sm:$0x1] }
  0xf1   :  { %1432 = vst [vmem:[#allocation2 + $0xb5] sm:$0x1] %v1431_v55  ;;  %1434 = vst [vmem:[#allocation2 + $0xbd] sm:$0x1] %v1433_v56  ;;  %v1437_v58 = vld [vmem:[%s4953_s27 + $0x48] sm:$0x1] }
  0xf2   :  { %1436 = vst [vmem:[#allocation2 + $0xc5] sm:$0x1] %v1435_v57  ;;  %v1439_v59 = vld [vmem:[%s4953_s27 + $0x50] sm:$0x1]  ;;  %v1441_v60 = vld [vmem:[%s4953_s27 + $0x58] sm:$0x1] }
  0xf3   :  { %1438 = vst [vmem:[#allocation2 + $0xcd] sm:$0x1] %v1437_v58  ;;  %1440 = vst [vmem:[#allocation2 + $0xd5] sm:$0x1] %v1439_v59  ;;  %v1443_v61 = vld [vmem:[%s4953_s27 + $0x60] sm:$0x1] }
  0xf4   :  { %1442 = vst [vmem:[#allocation2 + $0xdd] sm:$0x1] %v1441_v60  ;;  %v1445_v62 = vld [vmem:[%s4953_s27 + $0x68] sm:$0x1]  ;;  %v1447_v63 = vld [vmem:[%s4953_s27 + $0x70] sm:$0x1] }
  0xf5   :  { %1444 = vst [vmem:[#allocation2 + $0xe5] sm:$0x1] %v1443_v61  ;;  %1446 = vst [vmem:[#allocation2 + $0xed] sm:$0x1] %v1445_v62  ;;  %v1449_v0 = vld [vmem:[%s4953_s27 + $0x78] sm:$0x1] }
  0xf6   :  { %1448 = vst [vmem:[#allocation2 + $0xf5] sm:$0x1] %v1447_v63  ;;  %1450 = vst [vmem:[#allocation2 + $0xfd] sm:$0x1] %v1449_v0 }
  0xf7   :  { %1514 = vsyncadd [#allocation3 + $0xd], 256  ;;  %s4065_s28 = sld [smem:[#allocation5 + $0x6]] }
  0xf8   :  { %s4971_s29 = sld [smem:[#allocation8 + $0x6]] }
  0xfd   :  { %s1517_s30 = sshrl.u32 %s4065_s28, 3  ;;  %s1518_s8 = sand.u32 7, %s4065_s28  }
  0xfe   :  { %s4067_s9 = sshll.u32 %s1517_s30, 7 }
  0xff   :  { %s1520_s4 = sadd.s32 %s4067_s9, %s1518_s8 }
 0x100   :  { %s4976_s1 = scalar_lea.vmem %s5469_s2, %s1520_s4 }
 0x101   :  { %v1542_v1 = vld [vmem:[%s4976_s1] sm:$0x1]  ;;  %v1544_v2 = vld [vmem:[%s4976_s1 + $0x8] sm:$0x1]  ;;  %v1546_v3 = vld [vmem:[%s4976_s1 + $0x10] sm:$0x1] }
 0x102   :  { %1543 = vst [vmem:[#allocation2 + $0x6] sm:$0x1] %v1542_v1  ;;  %1545 = vst [vmem:[#allocation2 + $0xe] sm:$0x1] %v1544_v2  ;;  %v1548_v4 = vld [vmem:[%s4976_s1 + $0x18] sm:$0x1] }
 0x103   :  { %1547 = vst [vmem:[#allocation2 + $0x16] sm:$0x1] %v1546_v3  ;;  %v1550_v5 = vld [vmem:[%s4976_s1 + $0x20] sm:$0x1]  ;;  %v1552_v6 = vld [vmem:[%s4976_s1 + $0x28] sm:$0x1] }
 0x104   :  { %1549 = vst [vmem:[#allocation2 + $0x1e] sm:$0x1] %v1548_v4  ;;  %1551 = vst [vmem:[#allocation2 + $0x26] sm:$0x1] %v1550_v5  ;;  %v1554_v7 = vld [vmem:[%s4976_s1 + $0x30] sm:$0x1] }
 0x105   :  { %1553 = vst [vmem:[#allocation2 + $0x2e] sm:$0x1] %v1552_v6  ;;  %v1556_v8 = vld [vmem:[%s4976_s1 + $0x38] sm:$0x1]  ;;  %v1558_v9 = vld [vmem:[%s4976_s1 + $0x40] sm:$0x1] }
 0x106   :  { %1555 = vst [vmem:[#allocation2 + $0x36] sm:$0x1] %v1554_v7  ;;  %1557 = vst [vmem:[#allocation2 + $0x3e] sm:$0x1] %v1556_v8  ;;  %v1560_v10 = vld [vmem:[%s4976_s1 + $0x48] sm:$0x1] }
 0x107   :  { %1559 = vst [vmem:[#allocation2 + $0x46] sm:$0x1] %v1558_v9  ;;  %v1562_v11 = vld [vmem:[%s4976_s1 + $0x50] sm:$0x1]  ;;  %v1564_v12 = vld [vmem:[%s4976_s1 + $0x58] sm:$0x1] }
 0x108   :  { %1561 = vst [vmem:[#allocation2 + $0x4e] sm:$0x1] %v1560_v10  ;;  %1563 = vst [vmem:[#allocation2 + $0x56] sm:$0x1] %v1562_v11  ;;  %v1566_v13 = vld [vmem:[%s4976_s1 + $0x60] sm:$0x1] }
 0x109   :  { %1565 = vst [vmem:[#allocation2 + $0x5e] sm:$0x1] %v1564_v12  ;;  %v1568_v14 = vld [vmem:[%s4976_s1 + $0x68] sm:$0x1]  ;;  %v1570_v15 = vld [vmem:[%s4976_s1 + $0x70] sm:$0x1] }
 0x10a   :  { %1567 = vst [vmem:[#allocation2 + $0x66] sm:$0x1] %v1566_v13  ;;  %1569 = vst [vmem:[#allocation2 + $0x6e] sm:$0x1] %v1568_v14  ;;  %v1572_v16 = vld [vmem:[%s4976_s1 + $0x78] sm:$0x1] }
 0x10b   :  { %1571 = vst [vmem:[#allocation2 + $0x76] sm:$0x1] %v1570_v15  ;;  %1573 = vst [vmem:[#allocation2 + $0x7e] sm:$0x1] %v1572_v16 }
 0x10c   :  { %1637 = vsyncadd [#allocation3 + $0x6], 256  ;;  %s1638_s11 = sshrl.u32 %s4971_s29, 3  ;;  %s1639_s12 = sand.u32 7, %s4971_s29  }
 0x10d   :  { %s4068_s13 = sshll.u32 %s1638_s11, 7 }
 0x10e   :  { %s1641_s14 = sadd.s32 %s4068_s13, %s1639_s12 }
 0x10f   :  { %s4999_s17 = scalar_lea.vmem %s5469_s2, %s1641_s14 }
 0x110   :  { %v1663_v17 = vld [vmem:[%s4999_s17] sm:$0x1]  ;;  %v1665_v18 = vld [vmem:[%s4999_s17 + $0x8] sm:$0x1]  ;;  %v1667_v19 = vld [vmem:[%s4999_s17 + $0x10] sm:$0x1] }
 0x111   :  { %1664 = vst [vmem:[#allocation2 + $0x86] sm:$0x1] %v1663_v17  ;;  %1666 = vst [vmem:[#allocation2 + $0x8e] sm:$0x1] %v1665_v18  ;;  %v1669_v20 = vld [vmem:[%s4999_s17 + $0x18] sm:$0x1] }
 0x112   :  { %1668 = vst [vmem:[#allocation2 + $0x96] sm:$0x1] %v1667_v19  ;;  %v1671_v21 = vld [vmem:[%s4999_s17 + $0x20] sm:$0x1]  ;;  %v1673_v22 = vld [vmem:[%s4999_s17 + $0x28] sm:$0x1] }
 0x113   :  { %1670 = vst [vmem:[#allocation2 + $0x9e] sm:$0x1] %v1669_v20  ;;  %1672 = vst [vmem:[#allocation2 + $0xa6] sm:$0x1] %v1671_v21  ;;  %v1675_v23 = vld [vmem:[%s4999_s17 + $0x30] sm:$0x1] }
 0x114   :  { %1674 = vst [vmem:[#allocation2 + $0xae] sm:$0x1] %v1673_v22  ;;  %v1677_v24 = vld [vmem:[%s4999_s17 + $0x38] sm:$0x1]  ;;  %v1679_v25 = vld [vmem:[%s4999_s17 + $0x40] sm:$0x1] }
 0x115   :  { %1676 = vst [vmem:[#allocation2 + $0xb6] sm:$0x1] %v1675_v23  ;;  %1678 = vst [vmem:[#allocation2 + $0xbe] sm:$0x1] %v1677_v24  ;;  %v1681_v26 = vld [vmem:[%s4999_s17 + $0x48] sm:$0x1] }
 0x116   :  { %1680 = vst [vmem:[#allocation2 + $0xc6] sm:$0x1] %v1679_v25  ;;  %v1683_v27 = vld [vmem:[%s4999_s17 + $0x50] sm:$0x1]  ;;  %v1685_v28 = vld [vmem:[%s4999_s17 + $0x58] sm:$0x1] }
 0x117   :  { %1682 = vst [vmem:[#allocation2 + $0xce] sm:$0x1] %v1681_v26  ;;  %1684 = vst [vmem:[#allocation2 + $0xd6] sm:$0x1] %v1683_v27  ;;  %v1687_v29 = vld [vmem:[%s4999_s17 + $0x60] sm:$0x1] }
 0x118   :  { %1686 = vst [vmem:[#allocation2 + $0xde] sm:$0x1] %v1685_v28  ;;  %v1689_v30 = vld [vmem:[%s4999_s17 + $0x68] sm:$0x1]  ;;  %v1691_v31 = vld [vmem:[%s4999_s17 + $0x70] sm:$0x1] }
 0x119   :  { %1688 = vst [vmem:[#allocation2 + $0xe6] sm:$0x1] %v1687_v29  ;;  %1690 = vst [vmem:[#allocation2 + $0xee] sm:$0x1] %v1689_v30  ;;  %v1693_v32 = vld [vmem:[%s4999_s17 + $0x78] sm:$0x1] }
 0x11a   :  { %1692 = vst [vmem:[#allocation2 + $0xf6] sm:$0x1] %v1691_v31  ;;  %1694 = vst [vmem:[#allocation2 + $0xfe] sm:$0x1] %v1693_v32 }
 0x11b   :  { %1758 = vsyncadd [#allocation3 + $0xe], 256  ;;  %s4069_s18 = sld [smem:[#allocation5 + $0x7]] }
 0x11c   :  { %s5017_s19 = sld [smem:[#allocation8 + $0x7]] }
 0x121   :  { %s1761_s20 = sshrl.u32 %s4069_s18, 3  ;;  %s1762_s21 = sand.u32 7, %s4069_s18  }
 0x122   :  { %s4071_s22 = sshll.u32 %s1761_s20, 7 }
 0x123   :  { %s1764_s23 = sadd.s32 %s4071_s22, %s1762_s21 }
 0x124   :  { %s5022_s26 = scalar_lea.vmem %s5469_s2, %s1764_s23 }
 0x125   :  { %v1786_v33 = vld [vmem:[%s5022_s26] sm:$0x1]  ;;  %v1788_v34 = vld [vmem:[%s5022_s26 + $0x8] sm:$0x1]  ;;  %v1790_v35 = vld [vmem:[%s5022_s26 + $0x10] sm:$0x1] }
 0x126   :  { %1787 = vst [vmem:[#allocation2 + $0x7] sm:$0x1] %v1786_v33  ;;  %1789 = vst [vmem:[#allocation2 + $0xf] sm:$0x1] %v1788_v34  ;;  %v1792_v36 = vld [vmem:[%s5022_s26 + $0x18] sm:$0x1] }
 0x127   :  { %1791 = vst [vmem:[#allocation2 + $0x17] sm:$0x1] %v1790_v35  ;;  %v1794_v37 = vld [vmem:[%s5022_s26 + $0x20] sm:$0x1]  ;;  %v1796_v38 = vld [vmem:[%s5022_s26 + $0x28] sm:$0x1] }
 0x128   :  { %1793 = vst [vmem:[#allocation2 + $0x1f] sm:$0x1] %v1792_v36  ;;  %1795 = vst [vmem:[#allocation2 + $0x27] sm:$0x1] %v1794_v37  ;;  %v1798_v39 = vld [vmem:[%s5022_s26 + $0x30] sm:$0x1] }
 0x129   :  { %1797 = vst [vmem:[#allocation2 + $0x2f] sm:$0x1] %v1796_v38  ;;  %v1800_v40 = vld [vmem:[%s5022_s26 + $0x38] sm:$0x1]  ;;  %v1802_v41 = vld [vmem:[%s5022_s26 + $0x40] sm:$0x1] }
 0x12a   :  { %1799 = vst [vmem:[#allocation2 + $0x37] sm:$0x1] %v1798_v39  ;;  %1801 = vst [vmem:[#allocation2 + $0x3f] sm:$0x1] %v1800_v40  ;;  %v1804_v42 = vld [vmem:[%s5022_s26 + $0x48] sm:$0x1] }
 0x12b   :  { %1803 = vst [vmem:[#allocation2 + $0x47] sm:$0x1] %v1802_v41  ;;  %v1806_v43 = vld [vmem:[%s5022_s26 + $0x50] sm:$0x1]  ;;  %v1808_v44 = vld [vmem:[%s5022_s26 + $0x58] sm:$0x1] }
 0x12c   :  { %1805 = vst [vmem:[#allocation2 + $0x4f] sm:$0x1] %v1804_v42  ;;  %1807 = vst [vmem:[#allocation2 + $0x57] sm:$0x1] %v1806_v43  ;;  %v1810_v45 = vld [vmem:[%s5022_s26 + $0x60] sm:$0x1] }
 0x12d   :  { %1809 = vst [vmem:[#allocation2 + $0x5f] sm:$0x1] %v1808_v44  ;;  %v1812_v46 = vld [vmem:[%s5022_s26 + $0x68] sm:$0x1]  ;;  %v1814_v47 = vld [vmem:[%s5022_s26 + $0x70] sm:$0x1] }
 0x12e   :  { %1811 = vst [vmem:[#allocation2 + $0x67] sm:$0x1] %v1810_v45  ;;  %1813 = vst [vmem:[#allocation2 + $0x6f] sm:$0x1] %v1812_v46  ;;  %v1816_v48 = vld [vmem:[%s5022_s26 + $0x78] sm:$0x1] }
 0x12f   :  { %1815 = vst [vmem:[#allocation2 + $0x77] sm:$0x1] %v1814_v47  ;;  %1817 = vst [vmem:[#allocation2 + $0x7f] sm:$0x1] %v1816_v48 }
 0x130   :  { %1881 = vsyncadd [#allocation3 + $0x7], 256  ;;  %s1882_s27 = sshrl.u32 %s5017_s19, 3  ;;  %s1883_s28 = sand.u32 7, %s5017_s19  }
 0x131   :  { %s4072_s29 = sshll.u32 %s1882_s27, 7 }
 0x132   :  { %s1885_s30 = sadd.s32 %s4072_s29, %s1883_s28 }
 0x133   :  { %s5045_s4 = scalar_lea.vmem %s5469_s2, %s1885_s30 }
 0x134   :  { %v1907_v49 = vld [vmem:[%s5045_s4] sm:$0x1]  ;;  %v1909_v50 = vld [vmem:[%s5045_s4 + $0x8] sm:$0x1]  ;;  %v1911_v51 = vld [vmem:[%s5045_s4 + $0x10] sm:$0x1] }
 0x135   :  { %1908 = vst [vmem:[#allocation2 + $0x87] sm:$0x1] %v1907_v49  ;;  %1910 = vst [vmem:[#allocation2 + $0x8f] sm:$0x1] %v1909_v50  ;;  %v1913_v52 = vld [vmem:[%s5045_s4 + $0x18] sm:$0x1] }
 0x136   :  { %1912 = vst [vmem:[#allocation2 + $0x97] sm:$0x1] %v1911_v51  ;;  %v1915_v53 = vld [vmem:[%s5045_s4 + $0x20] sm:$0x1]  ;;  %v1917_v54 = vld [vmem:[%s5045_s4 + $0x28] sm:$0x1] }
 0x137   :  { %1914 = vst [vmem:[#allocation2 + $0x9f] sm:$0x1] %v1913_v52  ;;  %1916 = vst [vmem:[#allocation2 + $0xa7] sm:$0x1] %v1915_v53  ;;  %v1919_v55 = vld [vmem:[%s5045_s4 + $0x30] sm:$0x1] }
 0x138   :  { %1918 = vst [vmem:[#allocation2 + $0xaf] sm:$0x1] %v1917_v54  ;;  %v1921_v56 = vld [vmem:[%s5045_s4 + $0x38] sm:$0x1]  ;;  %v1923_v57 = vld [vmem:[%s5045_s4 + $0x40] sm:$0x1] }
 0x139   :  { %1920 = vst [vmem:[#allocation2 + $0xb7] sm:$0x1] %v1919_v55  ;;  %1922 = vst [vmem:[#allocation2 + $0xbf] sm:$0x1] %v1921_v56  ;;  %v1925_v58 = vld [vmem:[%s5045_s4 + $0x48] sm:$0x1] }
 0x13a   :  { %1924 = vst [vmem:[#allocation2 + $0xc7] sm:$0x1] %v1923_v57  ;;  %v1927_v59 = vld [vmem:[%s5045_s4 + $0x50] sm:$0x1]  ;;  %v1929_v60 = vld [vmem:[%s5045_s4 + $0x58] sm:$0x1] }
 0x13b   :  { %1926 = vst [vmem:[#allocation2 + $0xcf] sm:$0x1] %v1925_v58  ;;  %1928 = vst [vmem:[#allocation2 + $0xd7] sm:$0x1] %v1927_v59  ;;  %v1931_v61 = vld [vmem:[%s5045_s4 + $0x60] sm:$0x1] }
 0x13c   :  { %1930 = vst [vmem:[#allocation2 + $0xdf] sm:$0x1] %v1929_v60  ;;  %v1933_v62 = vld [vmem:[%s5045_s4 + $0x68] sm:$0x1]  ;;  %v1935_v63 = vld [vmem:[%s5045_s4 + $0x70] sm:$0x1] }
 0x13d   :  { %1932 = vst [vmem:[#allocation2 + $0xe7] sm:$0x1] %v1931_v61  ;;  %1934 = vst [vmem:[#allocation2 + $0xef] sm:$0x1] %v1933_v62  ;;  %v1937_v0 = vld [vmem:[%s5045_s4 + $0x78] sm:$0x1] }
 0x13e   :  { %1936 = vst [vmem:[#allocation2 + $0xf7] sm:$0x1] %v1935_v63  ;;  %1938 = vst [vmem:[#allocation2 + $0xff] sm:$0x1] %v1937_v0 }
 0x13f   :  { %2002 = vsyncadd [#allocation3 + $0xf], 256 }
 0x140   :  { %4606 = dma.done.wait [#allocation3], 256 }
 0x141   :  { %4607 = vsyncadd [#allocation3], 4294967040 }
 0x142   :  { %4608 = dma.done.wait [#allocation3 + $0x1], 256 }
 0x143   :  { %4609 = vsyncadd [#allocation3 + $0x1], 4294967040 }
 0x144   :  { %4610 = dma.done.wait [#allocation3 + $0x2], 256 }
 0x145   :  { %4611 = vsyncadd [#allocation3 + $0x2], 4294967040 }
 0x146   :  { %4612 = dma.done.wait [#allocation3 + $0x3], 256 }
 0x147   :  { %4613 = vsyncadd [#allocation3 + $0x3], 4294967040 }
 0x148   :  { %4614 = dma.done.wait [#allocation3 + $0x4], 256 }
 0x149   :  { %4615 = vsyncadd [#allocation3 + $0x4], 4294967040 }
 0x14a   :  { %4616 = dma.done.wait [#allocation3 + $0x5], 256 }
 0x14b   :  { %4617 = vsyncadd [#allocation3 + $0x5], 4294967040 }
 0x14c   :  { %4618 = dma.done.wait [#allocation3 + $0x6], 256 }
 0x14d   :  { %4619 = vsyncadd [#allocation3 + $0x6], 4294967040 }
 0x14e   :  { %4620 = dma.done.wait [#allocation3 + $0x7], 256 }
 0x14f   :  { %4621 = vsyncadd [#allocation3 + $0x7], 4294967040 }
 0x150   :  { %4622 = dma.done.wait [#allocation3 + $0x8], 256 }
 0x151   :  { %4623 = vsyncadd [#allocation3 + $0x8], 4294967040 }
 0x152   :  { %4624 = dma.done.wait [#allocation3 + $0x9], 256 }
 0x153   :  { %4625 = vsyncadd [#allocation3 + $0x9], 4294967040 }
 0x154   :  { %4626 = dma.done.wait [#allocation3 + $0xa], 256 }
 0x155   :  { %4627 = vsyncadd [#allocation3 + $0xa], 4294967040 }
 0x156   :  { %4628 = dma.done.wait [#allocation3 + $0xb], 256 }
 0x157   :  { %4629 = vsyncadd [#allocation3 + $0xb], 4294967040 }
 0x158   :  { %4630 = dma.done.wait [#allocation3 + $0xc], 256 }
 0x159   :  { %4631 = vsyncadd [#allocation3 + $0xc], 4294967040 }
 0x15a   :  { %4632 = dma.done.wait [#allocation3 + $0xd], 256 }
 0x15b   :  { %4633 = vsyncadd [#allocation3 + $0xd], 4294967040 }
 0x15c   :  { %4634 = dma.done.wait [#allocation3 + $0xe], 256 }
 0x15d   :  { %4635 = vsyncadd [#allocation3 + $0xe], 4294967040 }
 0x15e   :  { %4636 = dma.done.wait [#allocation3 + $0xf], 256 }
 0x15f   :  { %4637 = vsyncadd [#allocation3 + $0xf], 4294967040  ;;  %v4410_v1 = vld [vmem:[%s5470_s3 + $0x78] sm:$0xff]   ;;  %v4414_v5 = vld [vmem:[%s5470_s3 + $0x70] sm:$0xff]   ;;  %vm3437_vm0 = vcmask 261120   ;;  %vm4644_vm1 = vmmov 0  }
 0x160   :  { %v4411_v2 = vld [vmem:[%s5470_s3 + $0xf8] sm:$0xff]   ;;  %4219 = vmatprep.subr.bf16.mxu0 %v4410_v1  ;;  %v4415_v6 = vld [vmem:[%s5470_s3 + $0xf0] sm:$0xff]   ;;  %v4418_v9 = vld [vmem:[%s5470_s3 + $0x68] sm:$0xff]   ;;  %vm3576_vm6 = vcmask 64512   ;;  %vm3618_vm7 = vcmask 57344   ;;  %vm3560_vm8 = vcmask 7168  }
 0x161   :  { %v4412_v3 = vld [vmem:[%s5470_s3 + $0x38] sm:$0xff]   ;;  %4241 = vmatprep.subr.bf16.mxu1 %v4411_v2  ;;  %v4416_v7 = vld [vmem:[%s5470_s3 + $0x30] sm:$0xff]   ;;  %v4419_v10 = vld [vmem:[%s5470_s3 + $0xe8] sm:$0xff]   ;;  %vm3627_vm9 = vcmask 0  }
 0x162   :  { %v4413_v4 = vld [vmem:[%s5470_s3 + $0xb8] sm:$0xff]   ;;  %4220 = vmatpush3.bf16.msra.mxu0 %v4412_v3  ;;  %v4417_v8 = vld [vmem:[%s5470_s3 + $0xb0] sm:$0xff]   ;;  %v4420_v11 = vld [vmem:[%s5470_s3 + $0x28] sm:$0xff]  }
 0x163   :  { %4242 = vmatpush3.bf16.msra.mxu1 %v4413_v4  ;;  %4221 = vmatprep.subr.bf16.mxu0 %v4414_v5  ;;  %v4421_v12 = vld [vmem:[%s5470_s3 + $0xa8] sm:$0xff]   ;;  %v4422_v13 = vld [vmem:[%s5470_s3 + $0x60] sm:$0xff]   ;;  %v4426_v17 = vld [vmem:[%s5470_s3 + $0x58] sm:$0xff]  }
 0x164   :  { %4243 = vmatprep.subr.bf16.mxu1 %v4415_v6  ;;  %v4423_v14 = vld [vmem:[%s5470_s3 + $0xe0] sm:$0xff]   ;;  %v4427_v18 = vld [vmem:[%s5470_s3 + $0xd8] sm:$0xff]   ;;  %v4430_v21 = vld [vmem:[%s5470_s3 + $0x50] sm:$0xff]  }
 0x165   :  { %v4424_v15 = vld [vmem:[%s5470_s3 + $0x20] sm:$0xff]   ;;  %v4428_v19 = vld [vmem:[%s5470_s3 + $0x18] sm:$0xff]   ;;  %v4431_v22 = vld [vmem:[%s5470_s3 + $0xd0] sm:$0xff]  }
 0x166   :  { %4222 = vmatpush3.bf16.msra.mxu0 %v4416_v7  ;;  %v4425_v16 = vld [vmem:[%s5470_s3 + $0xa0] sm:$0xff]   ;;  %v4429_v20 = vld [vmem:[%s5470_s3 + $0x98] sm:$0xff]   ;;  %v4432_v23 = vld [vmem:[%s5470_s3 + $0x10] sm:$0xff]  }
 0x167   :  { %4244 = vmatpush3.bf16.msra.mxu1 %v4417_v8  ;;  %4223 = vmatprep.subr.bf16.mxu0 %v4418_v9  ;;  %v4433_v24 = vld [vmem:[%s5470_s3 + $0x90] sm:$0xff]   ;;  %v4434_v25 = vld [vmem:[%s5470_s3 + $0x48] sm:$0xff]   ;;  %v4438_v29 = vld [vmem:[%s5470_s3 + $0x40] sm:$0xff]  }
 0x168   :  { %4245 = vmatprep.subr.bf16.mxu1 %v4419_v10  ;;  %v4435_v26 = vld [vmem:[%s5470_s3 + $0xc8] sm:$0xff]   ;;  %v4439_v30 = vld [vmem:[%s5470_s3 + $0xc0] sm:$0xff]   ;;  %v2039_v35 = vld [vmem:[#allocation2 + $0x18] sm:$0xff] }
 0x169   :  { %v4436_v27 = vld [vmem:[%s5470_s3 + $0x8] sm:$0xff]   ;;  %v4440_v31 = vld [vmem:[%s5470_s3] sm:$0xff]   ;;  %v2055_v37 = vld [vmem:[#allocation2 + $0x98] sm:$0xff] }
 0x16a   :  { %4224 = vmatpush3.bf16.msra.mxu0 %v4420_v11  ;;  %v4437_v28 = vld [vmem:[%s5470_s3 + $0x88] sm:$0xff]   ;;  %v4441_v32 = vld [vmem:[%s5470_s3 + $0x80] sm:$0xff]   ;;  %v2071_v40 = vpack.c.bf16 %v2055_v37, %v2039_v35  ;;  %v2038_v42 = vld [vmem:[#allocation2 + $0x10] sm:$0xff] }
 0x16b   :  { %4246 = vmatpush3.bf16.msra.mxu1 %v4421_v12  ;;  %4225 = vmatprep.subr.bf16.mxu0 %v4422_v13  ;;  %v2037_v33 = vld [vmem:[#allocation2 + $0x8] sm:$0xff]  ;;  %v2036_v38 = vld [vmem:[#allocation2] sm:$0xff]  ;;  %v2054_v43 = vld [vmem:[#allocation2 + $0x90] sm:$0xff] }
 0x16c   :  { %4247 = vmatprep.subr.bf16.mxu1 %v4423_v14  ;;  %v2053_v34 = vld [vmem:[#allocation2 + $0x88] sm:$0xff]  ;;  %v2052_v39 = vld [vmem:[#allocation2 + $0x80] sm:$0xff]  ;;  %v2070_v44 = vpack.c.bf16 %v2054_v43, %v2038_v42  ;;  %v4442_v45 = vld [vmem:[%s5470_s3 + $0x178] sm:$0xff]   ;;  %3181 = vmatprep.mubr.bf16.mxu1 %v2071_v40 }
 0x16d   :  { %v2069_v36 = vpack.c.bf16 %v2053_v34, %v2037_v33  ;;  %v2068_v41 = vpack.c.bf16 %v2052_v39, %v2036_v38  ;;  %v4443_v46 = vld [vmem:[%s5470_s3 + $0x1f8] sm:$0xff]   ;;  %v4446_v49 = vld [vmem:[%s5470_s3 + $0x170] sm:$0xff]   ;;  %v4450_v53 = vld [vmem:[%s5470_s3 + $0x168] sm:$0xff]  }
 0x16e   :  { %4226 = vmatpush3.bf16.msra.mxu0 %v4424_v15  ;;  %v4444_v47 = vld [vmem:[%s5470_s3 + $0x138] sm:$0xff]   ;;  %v4447_v50 = vld [vmem:[%s5470_s3 + $0x1f0] sm:$0xff]   ;;  %v4451_v54 = vld [vmem:[%s5470_s3 + $0x1e8] sm:$0xff]  }
 0x16f   :  { %4248 = vmatpush3.bf16.msra.mxu1 %v4425_v16  ;;  %4227 = vmatprep.subr.bf16.mxu0 %v4426_v17  ;;  %v4445_v48 = vld [vmem:[%s5470_s3 + $0x1b8] sm:$0xff]   ;;  %v4448_v51 = vld [vmem:[%s5470_s3 + $0x130] sm:$0xff]   ;;  %v4452_v55 = vld [vmem:[%s5470_s3 + $0x128] sm:$0xff]  }
 0x170   :  { %4249 = vmatprep.subr.bf16.mxu1 %v4427_v18  ;;  %3140 = vmatprep.mubr.bf16.mxu0 %v2069_v36  ;;  %v4449_v52 = vld [vmem:[%s5470_s3 + $0x1b0] sm:$0xff]   ;;  %v4453_v56 = vld [vmem:[%s5470_s3 + $0x1a8] sm:$0xff]   ;;  %v4454_v57 = vld [vmem:[%s5470_s3 + $0x160] sm:$0xff]  }
 0x171   :  { %v4455_v58 = vld [vmem:[%s5470_s3 + $0x1e0] sm:$0xff]   ;;  %v4458_v61 = vld [vmem:[%s5470_s3 + $0x158] sm:$0xff]   ;;  %v4462_v1 = vld [vmem:[%s5470_s3 + $0x150] sm:$0xff]  }
 0x172   :  { %4228 = vmatpush3.bf16.msra.mxu0 %v4428_v19  ;;  %v4456_v59 = vld [vmem:[%s5470_s3 + $0x120] sm:$0xff]   ;;  %v4459_v62 = vld [vmem:[%s5470_s3 + $0x1d8] sm:$0xff]   ;;  %v4463_v2 = vld [vmem:[%s5470_s3 + $0x1d0] sm:$0xff]  }
 0x173   :  { %4250 = vmatpush3.bf16.msra.mxu1 %v4429_v20  ;;  %4229 = vmatprep.subr.bf16.mxu0 %v4430_v21  ;;  %v4457_v60 = vld [vmem:[%s5470_s3 + $0x1a0] sm:$0xff]   ;;  %v4460_v63 = vld [vmem:[%s5470_s3 + $0x118] sm:$0xff]   ;;  %v4464_v3 = vld [vmem:[%s5470_s3 + $0x110] sm:$0xff]  }
 0x174   :  { %4251 = vmatprep.subr.bf16.mxu1 %v4431_v22  ;;  %v4461_v0 = vld [vmem:[%s5470_s3 + $0x198] sm:$0xff]   ;;  %v4465_v4 = vld [vmem:[%s5470_s3 + $0x190] sm:$0xff]   ;;  %v4466_v5 = vld [vmem:[%s5470_s3 + $0x148] sm:$0xff]  }
 0x175   :  { %v4467_v6 = vld [vmem:[%s5470_s3 + $0x1c8] sm:$0xff]   ;;  %v4470_v9 = vld [vmem:[%s5470_s3 + $0x140] sm:$0xff]   ;;  %v2043_v15 = vld [vmem:[#allocation2 + $0x38] sm:$0xff] }
 0x176   :  { %4230 = vmatpush3.bf16.msra.mxu0 %v4432_v23  ;;  %v4468_v7 = vld [vmem:[%s5470_s3 + $0x108] sm:$0xff]   ;;  %v4471_v10 = vld [vmem:[%s5470_s3 + $0x1c0] sm:$0xff]   ;;  %v2059_v16 = vld [vmem:[#allocation2 + $0xb8] sm:$0xff] }
 0x177   :  { %4252 = vmatpush3.bf16.msra.mxu1 %v4433_v24  ;;  %4231 = vmatprep.subr.bf16.mxu0 %v4434_v25  ;;  %v4469_v8 = vld [vmem:[%s5470_s3 + $0x188] sm:$0xff]   ;;  %v4472_v11 = vld [vmem:[%s5470_s3 + $0x100] sm:$0xff]   ;;  %v2075_v18 = vpack.c.bf16 %v2059_v16, %v2043_v15  ;;  %v2042_v21 = vld [vmem:[#allocation2 + $0x30] sm:$0xff] }
 0x178   :  { %4253 = vmatprep.subr.bf16.mxu1 %v4435_v26  ;;  %v4473_v12 = vld [vmem:[%s5470_s3 + $0x180] sm:$0xff]   ;;  %v2041_v13 = vld [vmem:[#allocation2 + $0x28] sm:$0xff]  ;;  %v2058_v23 = vld [vmem:[#allocation2 + $0xb0] sm:$0xff] }
 0x179   :  { %v2057_v14 = vld [vmem:[#allocation2 + $0xa8] sm:$0xff]  ;;  %v2040_v19 = vld [vmem:[#allocation2 + $0x20] sm:$0xff]  ;;  %v2074_v24 = vpack.c.bf16 %v2058_v23, %v2042_v21  ;;  %v4474_v25 = vld [vmem:[%s5470_s3 + $0x278] sm:$0xff]  }
 0x17a   :  { %4232 = vmatpush3.bf16.msra.mxu0 %v4436_v27  ;;  %v2073_v17 = vpack.c.bf16 %v2057_v14, %v2041_v13  ;;  %v2056_v20 = vld [vmem:[#allocation2 + $0xa0] sm:$0xff]  ;;  %v4475_v26 = vld [vmem:[%s5470_s3 + $0x2f8] sm:$0xff]   ;;  %v4482_v33 = vld [vmem:[%s5470_s3 + $0x268] sm:$0xff]  }
 0x17b   :  { %4254 = vmatpush3.bf16.msra.mxu1 %v4437_v28  ;;  %4233 = vmatprep.subr.bf16.mxu0 %v4438_v29  ;;  %v2072_v22 = vpack.c.bf16 %v2056_v20, %v2040_v19  ;;  %v4476_v27 = vld [vmem:[%s5470_s3 + $0x238] sm:$0xff]   ;;  %v4478_v29 = vld [vmem:[%s5470_s3 + $0x270] sm:$0xff]   ;;  %v4483_v34 = vld [vmem:[%s5470_s3 + $0x2e8] sm:$0xff]  }
 0x17c   :  { %4255 = vmatprep.subr.bf16.mxu1 %v4439_v30  ;;  %v4477_v28 = vld [vmem:[%s5470_s3 + $0x2b8] sm:$0xff]   ;;  %v4479_v30 = vld [vmem:[%s5470_s3 + $0x2f0] sm:$0xff]   ;;  %v4484_v35 = vld [vmem:[%s5470_s3 + $0x228] sm:$0xff]  }
 0x17d   :  { %v4485_v36 = vld [vmem:[%s5470_s3 + $0x2a8] sm:$0xff]   ;;  %v4486_v37 = vld [vmem:[%s5470_s3 + $0x260] sm:$0xff]   ;;  %v4491_v42 = vld [vmem:[%s5470_s3 + $0x2d8] sm:$0xff]  }
 0x17e   :  { %4234 = vmatpush3.bf16.msra.mxu0 %v4440_v31  ;;  %v4480_v31 = vld [vmem:[%s5470_s3 + $0x230] sm:$0xff]   ;;  %v4487_v38 = vld [vmem:[%s5470_s3 + $0x2e0] sm:$0xff]   ;;  %v4492_v43 = vld [vmem:[%s5470_s3 + $0x218] sm:$0xff]  }
 0x17f   :  { %4256 = vmatpush3.bf16.msra.mxu1 %v4441_v32  ;;  %4263 = vmatprep.subr.bf16.mxu0 %v4442_v45  ;;  %v4481_v32 = vld [vmem:[%s5470_s3 + $0x2b0] sm:$0xff]   ;;  %v4488_v39 = vld [vmem:[%s5470_s3 + $0x220] sm:$0xff]   ;;  %v4514_v13 = vld [vmem:[%s5470_s3 + $0x368] sm:$0xff]  }
 0x180   :  { %4285 = vmatprep.subr.bf16.mxu1 %v4443_v46  ;;  %v4489_v40 = vld [vmem:[%s5470_s3 + $0x2a0] sm:$0xff]   ;;  %v4494_v45 = vld [vmem:[%s5470_s3 + $0x250] sm:$0xff]   ;;  %v4515_v14 = vld [vmem:[%s5470_s3 + $0x3e8] sm:$0xff]  }
 0x181   :  { %3141 = vmatmul.mubr.bf16.vlgmr.msra.gmra.mxu0 %v2068_v41  ;;  %v4490_v41 = vld [vmem:[%s5470_s3 + $0x258] sm:$0xff]   ;;  %v4495_v46 = vld [vmem:[%s5470_s3 + $0x2d0] sm:$0xff]   ;;  %v4516_v15 = vld [vmem:[%s5470_s3 + $0x328] sm:$0xff]  }
 0x182   :  { %3182 = vmatmul.mubr.bf16.vlgmr.msra.gmra.mxu1 %v2070_v44  ;;  %4264 = vmatpush3.bf16.msra.mxu0 %v4444_v47  ;;  %v4493_v44 = vld [vmem:[%s5470_s3 + $0x298] sm:$0xff]   ;;  %v4496_v47 = vld [vmem:[%s5470_s3 + $0x210] sm:$0xff]   ;;  %v4517_v16 = vld [vmem:[%s5470_s3 + $0x3a8] sm:$0xff]  }
 0x183   :  { %4286 = vmatpush3.bf16.msra.mxu1 %v4445_v48  ;;  %4265 = vmatprep.subr.bf16.mxu0 %v4446_v49  ;;  %v4497_v48 = vld [vmem:[%s5470_s3 + $0x290] sm:$0xff]   ;;  %v4498_v49 = vld [vmem:[%s5470_s3 + $0x248] sm:$0xff]   ;;  %v4520_v19 = vld [vmem:[%s5470_s3 + $0x320] sm:$0xff]  }
 0x184   :  { %4287 = vmatprep.subr.bf16.mxu1 %v4447_v50  ;;  %3222 = vmatprep.mubr.bf16.mxu0 %v2073_v17  ;;  %v4499_v50 = vld [vmem:[%s5470_s3 + $0x2c8] sm:$0xff]   ;;  %v4518_v17 = vld [vmem:[%s5470_s3 + $0x360] sm:$0xff]   ;;  %v4522_v21 = vld [vmem:[%s5470_s3 + $0x358] sm:$0xff]  }
 0x185   :  { %3263 = vmatprep.mubr.bf16.mxu1 %v2075_v18  ;;  %v4519_v18 = vld [vmem:[%s5470_s3 + $0x3e0] sm:$0xff]   ;;  %v4524_v23 = vld [vmem:[%s5470_s3 + $0x318] sm:$0xff]  }
 0x186   :  { %4266 = vmatpush3.bf16.msra.mxu0 %v4448_v51  ;;  %v4500_v51 = vld [vmem:[%s5470_s3 + $0x208] sm:$0xff]   ;;  %v4521_v20 = vld [vmem:[%s5470_s3 + $0x3a0] sm:$0xff]  }
 0x187   :  { %4288 = vmatpush3.bf16.msra.mxu1 %v4449_v52  ;;  %4267 = vmatprep.subr.bf16.mxu0 %v4450_v53  ;;  %v4501_v52 = vld [vmem:[%s5470_s3 + $0x288] sm:$0xff]   ;;  %v4502_v53 = vld [vmem:[%s5470_s3 + $0x240] sm:$0xff]  }
 0x188   :  { %4289 = vmatprep.subr.bf16.mxu1 %v4451_v54  ;;  %v4503_v54 = vld [vmem:[%s5470_s3 + $0x2c0] sm:$0xff]  }
 0x18a   :  { %4268 = vmatpush3.bf16.msra.mxu0 %v4452_v55  ;;  %v4504_v55 = vld [vmem:[%s5470_s3 + $0x200] sm:$0xff]  }
 0x18b   :  { %4290 = vmatpush3.bf16.msra.mxu1 %v4453_v56  ;;  %4269 = vmatprep.subr.bf16.mxu0 %v4454_v57  ;;  %v4505_v56 = vld [vmem:[%s5470_s3 + $0x280] sm:$0xff]   ;;  %v2045_v57 = vld [vmem:[#allocation2 + $0x48] sm:$0xff] }
 0x18c   :  { %4291 = vmatprep.subr.bf16.mxu1 %v4455_v58  ;;  %v2061_v58 = vld [vmem:[#allocation2 + $0xc8] sm:$0xff] }
 0x18e   :  { %4270 = vmatpush3.bf16.msra.mxu0 %v4456_v59  ;;  %v2077_v59 = vpack.c.bf16 %v2061_v58, %v2045_v57 }
 0x18f   :  { %4292 = vmatpush3.bf16.msra.mxu1 %v4457_v60  ;;  %4271 = vmatprep.subr.bf16.mxu0 %v4458_v61  ;;  %v2047_v60 = vld [vmem:[#allocation2 + $0x58] sm:$0xff] }
 0x190   :  { %4293 = vmatprep.subr.bf16.mxu1 %v4459_v62  ;;  %v2063_v61 = vld [vmem:[#allocation2 + $0xd8] sm:$0xff]  ;;  %v2044_v62 = vld [vmem:[#allocation2 + $0x40] sm:$0xff] }
 0x192   :  { %4272 = vmatpush3.bf16.msra.mxu0 %v4460_v63  ;;  %v2079_v63 = vpack.c.bf16 %v2063_v61, %v2047_v60 }
 0x193   :  { %4294 = vmatpush3.bf16.msra.mxu1 %v4461_v0  ;;  %4273 = vmatprep.subr.bf16.mxu0 %v4462_v1  ;;  %v2060_v0 = vld [vmem:[#allocation2 + $0xc0] sm:$0xff]  ;;  %v2046_v1 = vld [vmem:[#allocation2 + $0x50] sm:$0xff] }
 0x194   :  { %4295 = vmatprep.subr.bf16.mxu1 %v4463_v2  ;;  %v2062_v2 = vld [vmem:[#allocation2 + $0xd0] sm:$0xff] }
 0x196   :  { %4274 = vmatpush3.bf16.msra.mxu0 %v4464_v3  ;;  %v2076_v3 = vpack.c.bf16 %v2060_v0, %v2044_v62 }
 0x197   :  { %4296 = vmatpush3.bf16.msra.mxu1 %v4465_v4  ;;  %4275 = vmatprep.subr.bf16.mxu0 %v4466_v5  ;;  %v2078_v4 = vpack.c.bf16 %v2062_v2, %v2046_v1  ;;  %v4506_v5 = vld [vmem:[%s5470_s3 + $0x378] sm:$0xff]  }
 0x198   :  { %4297 = vmatprep.subr.bf16.mxu1 %v4467_v6  ;;  %v4507_v6 = vld [vmem:[%s5470_s3 + $0x3f8] sm:$0xff]  }
 0x19a   :  { %4276 = vmatpush3.bf16.msra.mxu0 %v4468_v7  ;;  %v4508_v7 = vld [vmem:[%s5470_s3 + $0x338] sm:$0xff]  }
 0x19b   :  { %4298 = vmatpush3.bf16.msra.mxu1 %v4469_v8  ;;  %4277 = vmatprep.subr.bf16.mxu0 %v4470_v9  ;;  %v4509_v8 = vld [vmem:[%s5470_s3 + $0x3b8] sm:$0xff]   ;;  %v4510_v9 = vld [vmem:[%s5470_s3 + $0x370] sm:$0xff]  }
 0x19c   :  { %4299 = vmatprep.subr.bf16.mxu1 %v4471_v10  ;;  %v4511_v10 = vld [vmem:[%s5470_s3 + $0x3f0] sm:$0xff]  }
 0x19e   :  { %4278 = vmatpush3.bf16.msra.mxu0 %v4472_v11  ;;  %v4512_v11 = vld [vmem:[%s5470_s3 + $0x330] sm:$0xff]  }
 0x19f   :  { %4300 = vmatpush3.bf16.msra.mxu1 %v4473_v12  ;;  %4307 = vmatprep.subr.bf16.mxu0 %v4474_v25  ;;  %v4513_v12 = vld [vmem:[%s5470_s3 + $0x3b0] sm:$0xff]  }
 0x1a0   :  { %4329 = vmatprep.subr.bf16.mxu1 %v4475_v26  ;;  %v4526_v25 = vld [vmem:[%s5470_s3 + $0x350] sm:$0xff]  }
 0x1a1   :  { %3223 = vmatmul.mubr.bf16.vlgmr.msra.gmra.mxu0 %v2072_v22  ;;  %v4523_v22 = vld [vmem:[%s5470_s3 + $0x3d8] sm:$0xff]   ;;  %v4527_v26 = vld [vmem:[%s5470_s3 + $0x3d0] sm:$0xff]  }
 0x1a2   :  { %3264 = vmatmul.mubr.bf16.vlgmr.msra.gmra.mxu1 %v2074_v24  ;;  %4308 = vmatpush3.bf16.msra.mxu0 %v4476_v27  ;;  %v4525_v24 = vld [vmem:[%s5470_s3 + $0x398] sm:$0xff]   ;;  %v4528_v27 = vld [vmem:[%s5470_s3 + $0x310] sm:$0xff]  }
 0x1a3   :  { %4330 = vmatpush3.bf16.msra.mxu1 %v4477_v28  ;;  %4309 = vmatprep.subr.bf16.mxu0 %v4478_v29  ;;  %v4529_v28 = vld [vmem:[%s5470_s3 + $0x390] sm:$0xff]   ;;  %v4530_v29 = vld [vmem:[%s5470_s3 + $0x348] sm:$0xff]  }
 0x1a4   :  { %4331 = vmatprep.subr.bf16.mxu1 %v4479_v30  ;;  %3304 = vmatprep.mubr.bf16.mxu0 %v2077_v59  ;;  %v4531_v30 = vld [vmem:[%s5470_s3 + $0x3c8] sm:$0xff]  }
 0x1a5   :  { %3345 = vmatprep.mubr.bf16.mxu1 %v2079_v63 }
 0x1a6   :  { %4310 = vmatpush3.bf16.msra.mxu0 %v4480_v31  ;;  %v4532_v31 = vld [vmem:[%s5470_s3 + $0x308] sm:$0xff]  }
 0x1a7   :  { %4332 = vmatpush3.bf16.msra.mxu1 %v4481_v32  ;;  %4311 = vmatprep.subr.bf16.mxu0 %v4482_v33  ;;  %v4533_v32 = vld [vmem:[%s5470_s3 + $0x388] sm:$0xff]   ;;  %v4534_v33 = vld [vmem:[%s5470_s3 + $0x340] sm:$0xff]  }
 0x1a8   :  { %4333 = vmatprep.subr.bf16.mxu1 %v4483_v34  ;;  %v4535_v34 = vld [vmem:[%s5470_s3 + $0x3c0] sm:$0xff]  }
 0x1aa   :  { %4312 = vmatpush3.bf16.msra.mxu0 %v4484_v35  ;;  %v4536_v35 = vld [vmem:[%s5470_s3 + $0x300] sm:$0xff]  }
 0x1ab   :  { %4334 = vmatpush3.bf16.msra.mxu1 %v4485_v36  ;;  %4313 = vmatprep.subr.bf16.mxu0 %v4486_v37  ;;  %v4537_v36 = vld [vmem:[%s5470_s3 + $0x380] sm:$0xff]   ;;  %v2049_v37 = vld [vmem:[#allocation2 + $0x68] sm:$0xff] }
 0x1ac   :  { %4335 = vmatprep.subr.bf16.mxu1 %v4487_v38  ;;  %v2065_v38 = vld [vmem:[#allocation2 + $0xe8] sm:$0xff] }
 0x1ae   :  { %4314 = vmatpush3.bf16.msra.mxu0 %v4488_v39  ;;  %v2051_v39 = vld [vmem:[#allocation2 + $0x78] sm:$0xff] }
 0x1af   :  { %4336 = vmatpush3.bf16.msra.mxu1 %v4489_v40  ;;  %4315 = vmatprep.subr.bf16.mxu0 %v4490_v41  ;;  %v2081_v40 = vpack.c.bf16 %v2065_v38, %v2049_v37  ;;  %v2067_v41 = vld [vmem:[#allocation2 + $0xf8] sm:$0xff] }
 0x1b0   :  { %4337 = vmatprep.subr.bf16.mxu1 %v4491_v42  ;;  %v2048_v42 = vld [vmem:[#allocation2 + $0x60] sm:$0xff] }
 0x1b2   :  { %4316 = vmatpush3.bf16.msra.mxu0 %v4492_v43  ;;  %v2064_v43 = vld [vmem:[#allocation2 + $0xe0] sm:$0xff] }
 0x1b3   :  { %4338 = vmatpush3.bf16.msra.mxu1 %v4493_v44  ;;  %4317 = vmatprep.subr.bf16.mxu0 %v4494_v45  ;;  %v2083_v44 = vpack.c.bf16 %v2067_v41, %v2051_v39  ;;  %v2080_v45 = vpack.c.bf16 %v2064_v43, %v2048_v42 }
 0x1b4   :  { %4339 = vmatprep.subr.bf16.mxu1 %v4495_v46  ;;  %v2050_v46 = vld [vmem:[#allocation2 + $0x70] sm:$0xff] }
 0x1b6   :  { %4318 = vmatpush3.bf16.msra.mxu0 %v4496_v47  ;;  %v2066_v47 = vld [vmem:[#allocation2 + $0xf0] sm:$0xff] }
 0x1b7   :  { %4340 = vmatpush3.bf16.msra.mxu1 %v4497_v48  ;;  %4319 = vmatprep.subr.bf16.mxu0 %v4498_v49  ;;  %v2082_v48 = vpack.c.bf16 %v2066_v47, %v2050_v46  ;;  %v3465_v49 = vld [vmem:[#allocation4] sm:$0x1] }
 0x1b8   :  { %4341 = vmatprep.subr.bf16.mxu1 %v4499_v50  ;;  %v4642_v50 = vmov 0  }
 0x1b9   :  { %4408 = vset.pattern.permute.xlu1 %v4642_v50  ;;  %4409 = vset.pattern.permute.xlu0 %v4642_v50 }
 0x1ba   :  { %4320 = vmatpush3.bf16.msra.mxu0 %v4500_v51  ;;  %v3466_v51 = vmul.f32 1.442695, %v3465_v49 }
 0x1bb   :  { %4342 = vmatpush3.bf16.msra.mxu1 %v4501_v52  ;;  %4321 = vmatprep.subr.bf16.mxu0 %v4502_v53  ;;  %v3469_v52 = vlaneseq }
 0x1bc   :  { %4343 = vmatprep.subr.bf16.mxu1 %v4503_v54  ;;  %4538 = vpow2.f32 %v3466_v51 }
 0x1bd   :  { %v3470_v53 = vshrl.u32 %v3469_v52, 7 }
 0x1be   :  { %4322 = vmatpush3.bf16.msra.mxu0 %v4504_v55 }
 0x1bf   :  { %4344 = vmatpush3.bf16.msra.mxu1 %v4505_v56  ;;  %4351 = vmatprep.subr.bf16.mxu0 %v4506_v5  ;;  %v3471_v54 = vsub.s32 0, %v3470_v53 }
 0x1c0   :  { %4373 = vmatprep.subr.bf16.mxu1 %v4507_v6 }
 0x1c1   :  { %3305 = vmatmul.mubr.bf16.vlgmr.msra.gmra.mxu0 %v2076_v3 }
 0x1c2   :  { %3346 = vmatmul.mubr.bf16.vlgmr.msra.gmra.mxu1 %v2078_v4  ;;  %4352 = vmatpush3.bf16.msra.mxu0 %v4508_v7 }
 0x1c3   :  { %4374 = vmatpush3.bf16.msra.mxu1 %v4509_v8  ;;  %4353 = vmatprep.subr.bf16.mxu0 %v4510_v9 }
 0x1c4   :  { %4375 = vmatprep.subr.bf16.mxu1 %v4511_v10  ;;  %3386 = vmatprep.mubr.bf16.mxu0 %v2081_v40 }
 0x1c5   :  { %3427 = vmatprep.mubr.bf16.mxu1 %v2083_v44 }
 0x1c6   :  { %4354 = vmatpush3.bf16.msra.mxu0 %v4512_v11 }
 0x1c7   :  { %4376 = vmatpush3.bf16.msra.mxu1 %v4513_v12  ;;  %4355 = vmatprep.subr.bf16.mxu0 %v4514_v13 }
 0x1c8   :  { %4377 = vmatprep.subr.bf16.mxu1 %v4515_v14 }
 0x1c9   :  { %v4539_v55 = vpop.eup %4538 }
 0x1ca   :  { %4356 = vmatpush3.bf16.msra.mxu0 %v4516_v15  ;;  %v3472_v56 = vrot.slane %v4539_v55, %v3471_v54 }
 0x1cb   :  { %4378 = vmatpush3.bf16.msra.mxu1 %v4517_v16  ;;  %4357 = vmatprep.subr.bf16.mxu0 %v4518_v17 }
 0x1cc   :  { %4379 = vmatprep.subr.bf16.mxu1 %v4519_v18  ;;  %3474 = vperm.xlu1 %4408, %v3472_v56  }
 0x1ce   :  { %4358 = vmatpush3.bf16.msra.mxu0 %v4520_v19 }
 0x1cf   :  { %4380 = vmatpush3.bf16.msra.mxu1 %v4521_v20  ;;  %4359 = vmatprep.subr.bf16.mxu0 %v4522_v21 }
 0x1d0   :  { %4381 = vmatprep.subr.bf16.mxu1 %v4523_v22 }
 0x1d2   :  { %4360 = vmatpush3.bf16.msra.mxu0 %v4524_v23 }
 0x1d3   :  { %4382 = vmatpush3.bf16.msra.mxu1 %v4525_v24  ;;  %4361 = vmatprep.subr.bf16.mxu0 %v4526_v25 }
 0x1d4   :  { %4383 = vmatprep.subr.bf16.mxu1 %v4527_v26 }
 0x1d6   :  { %4362 = vmatpush3.bf16.msra.mxu0 %v4528_v27 }
 0x1d7   :  { %4384 = vmatpush3.bf16.msra.mxu1 %v4529_v28  ;;  %4363 = vmatprep.subr.bf16.mxu0 %v4530_v29 }
 0x1d8   :  { %4385 = vmatprep.subr.bf16.mxu1 %v4531_v30 }
 0x1da   :  { %4364 = vmatpush3.bf16.msra.mxu0 %v4532_v31 }
 0x1db   :  { %4386 = vmatpush3.bf16.msra.mxu1 %v4533_v32  ;;  %4365 = vmatprep.subr.bf16.mxu0 %v4534_v33 }
 0x1dc   :  { %4387 = vmatprep.subr.bf16.mxu1 %v4535_v34 }
 0x1de   :  { %4366 = vmatpush3.bf16.msra.mxu0 %v4536_v35 }
 0x1df   :  { %4388 = vmatpush3.bf16.msra.mxu1 %v4537_v36 }
 0x1e1   :  { %3387 = vmatmul.mubr.bf16.vlgmr.msra.gmra.mxu0 %v2080_v45 }
 0x1e2   :  { %3428 = vmatmul.mubr.bf16.vlgmr.msra.gmra.mxu1 %v2082_v48 }
 0x241   :  { %v4235_v57 = vpop.f32.mrf.mxu0 }
 0x242   :  { %v4257_v58 = vpop.f32.mrf.mxu1 }
 0x243   :  { %v4236_v59 = vpop.f32.mrf.mxu0 }
 0x244   :  { %v4258_v60 = vpop.f32.mrf.mxu1  ;;  %v4237_v12 = vadd.f32 %v4236_v59, %v4235_v57  ;;  %v4643_v59 = vmov 0.0  }
 0x245   :  { %v4238_v61 = vpop.f32.mrf.mxu0  ;;  %v4259_v13 = vadd.f32 %v4258_v60, %v4257_v58  ;;  %4397 = vmatprep.subr.mxu0 %v4643_v59  ;;  %4399 = vmatprep.mubr.msk.f32.mxu0 %vm4644_vm1, %v4643_v59 }
 0x246   :  { %v4260_v62 = vpop.f32.mrf.mxu1 }
 0x247   :  { %v4239_v63 = vpop.f32.mrf.mxu0  ;;  %v3184_v19 = vadd.f32 %v4259_v13, %v4237_v12  ;;  %v3475_v13 = vpop.permute.xlu1 %3474 }
 0x248   :  { %v4261_v1 = vpop.f32.mrf.mxu1  ;;  %v4240_v14 = vadd.f32 %v4239_v63, %v4238_v61 }
 0x249   :  { %v4262_v15 = vadd.f32 %v4261_v1, %v4260_v62 }
 0x24b   :  { %v3187_v21 = vadd.f32 %v4262_v15, %v4240_v14 }
 0x261   :  { %v4279_v0 = vpop.f32.mrf.mxu0 }
 0x262   :  { %v4301_v2 = vpop.f32.mrf.mxu1 }
 0x263   :  { %v4280_v3 = vpop.f32.mrf.mxu0 }
 0x264   :  { %v4302_v4 = vpop.f32.mrf.mxu1  ;;  %v4281_v16 = vadd.f32 %v4280_v3, %v4279_v0 }
 0x265   :  { %v4282_v5 = vpop.f32.mrf.mxu0  ;;  %v4303_v23 = vadd.f32 %v4302_v4, %v4301_v2 }
 0x266   :  { %v4304_v6 = vpop.f32.mrf.mxu1  ;;  %v3225_v22 = vadd.f32 %v4281_v16, %v3184_v19 }
 0x267   :  { %v4283_v7 = vpop.f32.mrf.mxu0 }
 0x268   :  { %v4305_v9 = vpop.f32.mrf.mxu1  ;;  %v4284_v20 = vadd.f32 %v4283_v7, %v4282_v5  ;;  %v3266_v28 = vadd.f32 %v4303_v23, %v3225_v22 }
 0x269   :  { %v4306_v29 = vadd.f32 %v4305_v9, %v4304_v6 }
 0x26a   :  { %v3228_v26 = vadd.f32 %v4284_v20, %v3187_v21 }
 0x26c   :  { %v3269_v33 = vadd.f32 %v4306_v29, %v3228_v26 }
 0x281   :  { %v4323_v8 = vpop.f32.mrf.mxu0 }
 0x282   :  { %v4345_v10 = vpop.f32.mrf.mxu1 }
 0x283   :  { %v4324_v11 = vpop.f32.mrf.mxu0 }
 0x284   :  { %v4346_v17 = vpop.f32.mrf.mxu1  ;;  %v4325_v27 = vadd.f32 %v4324_v11, %v4323_v8 }
 0x285   :  { %v4326_v18 = vpop.f32.mrf.mxu0  ;;  %v4347_v35 = vadd.f32 %v4346_v17, %v4345_v10 }
 0x286   :  { %v4348_v24 = vpop.f32.mrf.mxu1  ;;  %v3307_v34 = vadd.f32 %v4325_v27, %v3266_v28 }
 0x287   :  { %v4327_v25 = vpop.f32.mrf.mxu0 }
 0x288   :  { %v4328_v30 = vadd.f32 %v4327_v25, %v4326_v18  ;;  %v4349_v31 = vpop.f32.mrf.mxu1  ;;  %v3348_v42 = vadd.f32 %v4347_v35, %v3307_v34 }
 0x289   :  { %v4350_v43 = vadd.f32 %v4349_v31, %v4348_v24 }
 0x28a   :  { %v3310_v38 = vadd.f32 %v4328_v30, %v3269_v33 }
 0x28c   :  { %v3351_v46 = vadd.f32 %v4350_v43, %v3310_v38 }
 0x2a1   :  { %v4367_v32 = vpop.f32.mrf.mxu0 }
 0x2a2   :  { %v4389_v36 = vpop.f32.mrf.mxu1 }
 0x2a3   :  { %v4368_v37 = vpop.f32.mrf.mxu0 }
 0x2a4   :  { %v4369_v39 = vadd.f32 %v4368_v37, %v4367_v32  ;;  %v4390_v40 = vpop.f32.mrf.mxu1 }
 0x2a5   :  { %v4370_v41 = vpop.f32.mrf.mxu0  ;;  %v4391_v50 = vadd.f32 %v4390_v40, %v4389_v36 }
 0x2a6   :  { %v4392_v44 = vpop.f32.mrf.mxu1  ;;  %v3389_v47 = vadd.f32 %v4369_v39, %v3348_v42 }
 0x2a7   :  { %v4371_v45 = vpop.f32.mrf.mxu0 }
 0x2a8   :  { %v4372_v48 = vadd.f32 %v4371_v45, %v4370_v41  ;;  %v4393_v49 = vpop.f32.mrf.mxu1  ;;  %v3430_v53 = vadd.f32 %v4391_v50, %v3389_v47 }
 0x2a9   :  { %v4394_v52 = vadd.f32 %v4393_v49, %v4392_v44  ;;  %v3559_v44 = vld [vmem:[%s5473_s6] sm:$0x1] }
 0x2aa   :  { %v3392_v51 = vadd.f32 %v4372_v48, %v3351_v46  ;;  %v3436_v57 = vmul.f32 %v3430_v53, %v3430_v53  ;;  %v3558_v48 = vld [vmem:[%s5472_s5] sm:$0xff]  ;;  %s4645_s5 = smov [#allocation10]  }
 0x2ab   :  { %v3561_v49 = vsel %vm3560_vm8, %v3558_v48, 0.0  ;;  %s3635_s6 = sshll.u32 %s4645_s5, 4  ;;  %s3636_s6 = int_to_ptr.vmem [resolvable:$true] %s3635_s6 }
 0x2ac   :  { %v3433_v54 = vadd.f32 %v4394_v52, %v3392_v51  ;;  %v3438_v58 = vsel %vm3437_vm0, %v3436_v57, 0.0  ;;  %v3562_v51 = vrot.slane %v3561_v49, 4  ;;  %s4582_s23 = scalar_lea.vmem %s3636_s6, 16  ;;  %s4586_s24 = scalar_lea.vmem %s3636_s6, 32 }
 0x2ad   :  { %p4583_p10 = scmp.ne.s32.totalorder %s3636_s6, %s4582_s23  ;;  %p4587_p11 = scmp.lt.s32.totalorder %s3636_s6, %s3636_s6 }
 0x2ae   :  { %v3448_v55 = vmul.f32 %v3433_v54, %v3433_v54  ;;  %v3563_v52 = vadd.f32 %v3562_v51, %v3561_v49  ;;  %p4588_p12 = scmp.lt.s32.totalorder %s4586_s24, %s4582_s23 }
 0x2b0   :  { %v3449_v56 = vsel %vm3437_vm0, %v3448_v55, 0.0  ;;  %p4589_p13 = por %p4588_p12, %p4587_p11 }
 0x2b1   :  { %3450 = vadd.xlane.f32.xlu0 %v3449_v56  ;;  %v3564_v56 = vrot.slane %v3563_v52, 2 }
 0x2b2   :  { %p4590_p0 = pnand %p4589_p13, %p4583_p10 }
 0x2b5   :  { %3439 = vadd.xlane.f32.xlu0 %v3438_v58  ;;  %v3565_v58 = vadd.f32 %v3564_v56, %v3563_v52 }
 0x33a   :  { %v3451_v60 = vpop.xlane.xlu0 %3450 }
 0x33b   :  { %4540 = vrsqrt.f32 %v3451_v60  ;;  %vm3454_vm2 = vcmp.eq.f32.partialorder %v3451_v60, inf  ;;  %v3457_v0 = vand.u32 2147483648, %v3451_v60  ;;  %vm3456_vm3 = vcmp.eq.f32.partialorder %v3451_v60, 0.0 }
 0x33e   :  { %v3440_v61 = vpop.xlane.xlu0 %3439 }
 0x33f   :  { %4542 = vrsqrt.f32 %v3440_v61  ;;  %vm3443_vm4 = vcmp.eq.f32.partialorder %v3440_v61, inf  ;;  %v3446_v6 = vand.u32 2147483648, %v3440_v61  ;;  %vm3445_vm5 = vcmp.eq.f32.partialorder %v3440_v61, 0.0 }
 0x348   :  { %v4541_v62 = vpop.eup %4540 }
 0x349   :  { %v3453_v63 = vmul.f32 %v4541_v62, %v3451_v60  ;;  %v3566_v62 = vrot.slane %v3565_v58, 1 }
 0x34b   :  { %v3455_v1 = vsel %vm3454_vm2, %v3451_v60, %v3453_v63 }
 0x34c   :  { %v4543_v2 = vpop.eup %4542  ;;  %v3458_v3 = vsel %vm3456_vm3, %v3457_v0, %v3455_v1 }
 0x34d   :  { %v3462_v4 = vmax.f32 %v3458_v3, 1e-12  ;;  %v3442_v5 = vmul.f32 %v4543_v2, %v3440_v61  ;;  %v3567_v2 = vadd.f32 %v3566_v62, %v3565_v58 }
 0x34f   :  { %4544 = vrcp.f32 %v3462_v4  ;;  %v3444_v7 = vsel %vm3443_vm4, %v3440_v61, %v3442_v5 }
 0x350   :  { %v3447_v8 = vsel %vm3445_vm5, %v3446_v6, %v3444_v7 }
 0x351   :  { %v3459_v9 = vmax.f32 %v3447_v8, 1e-12 }
 0x353   :  { %4546 = vrcp.f32 %v3459_v9 }
 0x35c   :  { %v4545_v10 = vpop.eup %4544 }
 0x35d   :  { %v3464_v11 = vmul.f32 %v4545_v10, %v3433_v54 }
 0x35f   :  { %4398 = vmatpush3.xpose.msk.msra.mxu0 %vm3437_vm0, %v3464_v11 }
 0x360   :  { %v4547_v12 = vpop.eup %4546 }
 0x361   :  { %v3461_v14 = vmul.f32 %v4547_v12, %v3430_v53 }
 0x363   :  { %v3477_v15 = vmul.f32 %v3475_v13, %v3461_v14 }
 0x365   :  { %4400 = vmatmul.mubr.msk.f32.vlgmr.msra.gmra.mxu0 %vm3437_vm0, %v3477_v15  ;;  %v3554_v16 = vmul.f32 %v3477_v15, %v3464_v11 }
 0x367   :  { %v3555_v45 = vsel %vm3437_vm0, %v3554_v16, 0.0 }
 0x425   :  { %v3550_v17 = vpop.f32.mrf.mxu0 }
 0x426   :  { %v3577_v18 = vsel %vm3576_vm6, %v3550_v17, -inf }
 0x427   :  { %3578 = vmax.xlane.f32.xlu1 %v3577_v18  ;;  %v4401_v19 = vpop.f32.mrf.mxu0  ;;  %v3598_v20 = vrot.slane %v3577_v18, 4 }
 0x429   :  { %v3599_v21 = vmax.f32 %v3577_v18, %v3598_v20 }
 0x42b   :  { %v3600_v22 = vrot.slane %v3599_v21, 2 }
 0x42d   :  { %v3601_v23 = vmax.f32 %v3599_v21, %v3600_v22 }
 0x42f   :  { %v3602_v24 = vrot.slane %v3601_v23, 1 }
 0x431   :  { %v3603_v25 = vmax.f32 %v3601_v23, %v3602_v24 }
 0x433   :  { %v3604_v26 = vsub.f32 %v3550_v17, %v3603_v25 }
 0x435   :  { %v3605_v27 = vmul.f32 1.442695, %v3604_v26 }
 0x437   :  { %4548 = vpow2.f32 %v3605_v27 }
 0x444   :  { %v4549_v28 = vpop.eup %4548 }
 0x445   :  { %v3607_v29 = vsel %vm3576_vm6, %v4549_v28, 0.0 }
 0x446   :  { %v3608_v30 = vrot.slane %v3607_v29, 4 }
 0x448   :  { %v3609_v31 = vadd.f32 %v3608_v30, %v3607_v29 }
 0x44a   :  { %v3610_v32 = vrot.slane %v3609_v31, 2 }
 0x44c   :  { %v3611_v33 = vadd.f32 %v3610_v32, %v3609_v31 }
 0x44e   :  { %v3612_v34 = vrot.slane %v3611_v33, 1 }
 0x450   :  { %v3613_v35 = vadd.f32 %v3612_v34, %v3611_v33 }
 0x452   :  { %4550 = vlog2.f32 %v3613_v35 }
 0x45f   :  { %v4551_v39 = vpop.eup %4550 }
 0x460   :  { %v3615_v40 = vmul.f32 0.6931472, %v4551_v39 }
 0x462   :  { %v3616_v43 = vadd.f32 %v3615_v40, %v3603_v25 }
 0x464   :  { %v3617_v46 = vmul.f32 %v3616_v43, %v3559_v44 }
 0x466   :  { %v3619_v47 = vsel %vm3618_vm7, %v3617_v46, 0.0 }
 0x4b0   :  { %v3579_v36 = vpop.xlane.xlu1 %3578 }
 0x4b1   :  { %v3580_v37 = vsub.f32 %v3550_v17, %v3579_v36 }
 0x4b3   :  { %v3581_v38 = vmul.f32 1.442695, %v3580_v37 }
 0x4b5   :  { %4552 = vpow2.f32 %v3581_v38 }
 0x4c2   :  { %v4553_v41 = vpop.eup %4552 }
 0x4c3   :  { %v3583_v42 = vsel %vm3576_vm6, %v4553_v41, 0.0 }
 0x4c4   :  { %3584 = vadd.xlane.f32.xlu0 %v3583_v42 }
 0x4c8   :  { %3556 = vadd.xlane.f32.xlu0 %v3555_v45 }
 0x4cc   :  { %3620 = vadd.xlane.f32.xlu0 %v3619_v47 }
 0x54d   :  { %v3585_v50 = vpop.xlane.xlu0 %3584 }
 0x54e   :  { %4554 = vlog2.f32 %v3585_v50 }
 0x54f   :  { %4556 = vrcp.f32 %v3567_v2 }
 0x551   :  { %v3557_v53 = vpop.xlane.xlu0 %3556 }
 0x552   :  { %v3568_v54 = vmul.f32 %v3558_v48, %v3557_v53 }
 0x554   :  { %v3569_v55 = vsel %vm3560_vm8, %v3568_v54, 0.0 }
 0x555   :  { %v3570_v57 = vrot.slane %v3569_v55, 4  ;;  %v3621_v13 = vpop.xlane.xlu0 %3620 }
 0x557   :  { %v3571_v60 = vadd.f32 %v3570_v57, %v3569_v55 }
 0x559   :  { %v3572_v0 = vrot.slane %v3571_v60, 2 }
 0x55b   :  { %v4555_v59 = vpop.eup %4554  ;;  %v3573_v5 = vadd.f32 %v3572_v0, %v3571_v60 }
 0x55c   :  { %v3587_v61 = vmul.f32 0.6931472, %v4555_v59  ;;  %v4557_v17 = vpop.eup %4556 }
 0x55d   :  { %v3574_v8 = vrot.slane %v3573_v5, 1 }
 0x55e   :  { %v3588_v63 = vadd.f32 %v3587_v61, %v3579_v36 }
 0x55f   :  { %v3575_v10 = vadd.f32 %v3574_v8, %v3573_v5 }
 0x560   :  { %v3589_v1 = vmul.f32 %v3588_v63, %v3558_v48 }
 0x561   :  { %v3622_v15 = vsub.f32 %v3621_v13, %v3575_v10 }
 0x562   :  { %v3590_v3 = vsel %vm3560_vm8, %v3589_v1, 0.0 }
 0x563   :  { %v3591_v4 = vrot.slane %v3590_v3, 4 }
 0x565   :  { %v3592_v6 = vadd.f32 %v3591_v4, %v3590_v3 }
 0x567   :  { %v3593_v7 = vrot.slane %v3592_v6, 2 }
 0x569   :  { %v3594_v9 = vadd.f32 %v3593_v7, %v3592_v6 }
 0x56b   :  { %v3595_v11 = vrot.slane %v3594_v9, 1 }
 0x56d   :  { %v3596_v12 = vadd.f32 %v3595_v11, %v3594_v9 }
 0x56f   :  { %v3597_v14 = vsub.f32 %v3596_v12, %v3575_v10 }
 0x571   :  { %v3623_v16 = vadd.f32 %v3622_v15, %v3597_v14 }
 0x573   :  { %v3624_v18 = vmul.f32 0.5, %v3623_v16 }
 0x575   :  { %v3626_v19 = vmul.f32 %v4557_v17, %v3624_v18 }
 0x577   :  { %3628 = vst.msk [vmem:[#allocation10] sm:$0x1] %vm3627_vm9, %v3626_v19 }
 0x578   :  { %4593 = shalt.err (!%p4590_p0)
}
 0x579   :  { %3638 = dma.vmem_to_hbm [thread:$0]  %s3636_s6, 16, %s5474_s7, [#allocation6]  }
 0x57a   :  { %4638 = dma.done.wait [#allocation6], 16  }
 0x57b   :  { %4639 = vsyncadd [#allocation6], 4294967280 }
 0x57c   :  { %3642 = vsyncpa [#allocation6], 1 }
 0x57d   :  { %3643 = vsyncpa [#allocation7], 1 }
 0x57e   :  { %3644 = vsyncpa [#allocation9], 1 }
 0x57f   :  { %3645 = vsyncmov [#allocation3] }
 0x582   :  { %s3646_s27 = vpop.sfrf %3645 }
 0x583   :  { %p4203_p1 = scmp.ne.s32.totalorder %s3646_s27, 0 }
 0x585   :  { %3650 = shalt.err (%p4203_p1)  }
 0x586   :  { %3652 = vsyncmov [#allocation3 + $0x1] }
 0x589   :  { %s3653_s28 = vpop.sfrf %3652 }
 0x58a   :  { %p4204_p2 = scmp.ne.s32.totalorder %s3653_s28, 0 }
 0x58c   :  { %3657 = shalt.err (%p4204_p2)  }
 0x58d   :  { %3659 = vsyncmov [#allocation3 + $0x2] }
 0x590   :  { %s3660_s29 = vpop.sfrf %3659 }
 0x591   :  { %p4205_p3 = scmp.ne.s32.totalorder %s3660_s29, 0 }
 0x593   :  { %3664 = shalt.err (%p4205_p3)  }
 0x594   :  { %3666 = vsyncmov [#allocation3 + $0x3] }
 0x597   :  { %s3667_s30 = vpop.sfrf %3666 }
 0x598   :  { %p4206_p4 = scmp.ne.s32.totalorder %s3667_s30, 0 }
 0x59a   :  { %3671 = shalt.err (%p4206_p4)  }
 0x59b   :  { %3673 = vsyncmov [#allocation3 + $0x4] }
 0x59e   :  { %s3674_s7 = vpop.sfrf %3673 }
 0x59f   :  { %p4207_p5 = scmp.ne.s32.totalorder %s3674_s7, 0 }
 0x5a1   :  { %3678 = shalt.err (%p4207_p5)  }
 0x5a2   :  { %3680 = vsyncmov [#allocation3 + $0x5] }
 0x5a5   :  { %s3681_s8 = vpop.sfrf %3680 }
 0x5a6   :  { %p4208_p6 = scmp.ne.s32.totalorder %s3681_s8, 0 }
 0x5a8   :  { %3685 = shalt.err (%p4208_p6)  }
 0x5a9   :  { %3687 = vsyncmov [#allocation3 + $0x6] }
 0x5ac   :  { %s3688_s9 = vpop.sfrf %3687 }
 0x5ad   :  { %p4209_p7 = scmp.ne.s32.totalorder %s3688_s9, 0 }
 0x5af   :  { %3692 = shalt.err (%p4209_p7)  }
 0x5b0   :  { %3694 = vsyncmov [#allocation3 + $0x7] }
 0x5b3   :  { %s3695_s4 = vpop.sfrf %3694 }
 0x5b4   :  { %p4210_p8 = scmp.ne.s32.totalorder %s3695_s4, 0 }
 0x5b6   :  { %3699 = shalt.err (%p4210_p8)  }
 0x5b7   :  { %3701 = vsyncmov [#allocation3 + $0x8] }
 0x5ba   :  { %s3702_s2 = vpop.sfrf %3701 }
 0x5bb   :  { %p4211_p9 = scmp.ne.s32.totalorder %s3702_s2, 0 }
 0x5bd   :  { %3706 = shalt.err (%p4211_p9)  }
 0x5be   :  { %3708 = vsyncmov [#allocation3 + $0x9] }
 0x5c1   :  { %s3709_s10 = vpop.sfrf %3708 }
 0x5c2   :  { %p4212_p10 = scmp.ne.s32.totalorder %s3709_s10, 0 }
 0x5c4   :  { %3713 = shalt.err (%p4212_p10)  }
 0x5c5   :  { %3715 = vsyncmov [#allocation3 + $0xa] }
 0x5c8   :  { %s3716_s0 = vpop.sfrf %3715 }
 0x5c9   :  { %p4213_p11 = scmp.ne.s32.totalorder %s3716_s0, 0 }
 0x5cb   :  { %3720 = shalt.err (%p4213_p11)  }
 0x5cc   :  { %3722 = vsyncmov [#allocation3 + $0xb] }
 0x5cf   :  { %s3723_s1 = vpop.sfrf %3722 }
 0x5d0   :  { %p4214_p12 = scmp.ne.s32.totalorder %s3723_s1, 0 }
 0x5d2   :  { %3727 = shalt.err (%p4214_p12)  }
 0x5d3   :  { %3729 = vsyncmov [#allocation3 + $0xc] }
 0x5d6   :  { %s3730_s11 = vpop.sfrf %3729 }
 0x5d7   :  { %p4215_p13 = scmp.ne.s32.totalorder %s3730_s11, 0 }
 0x5d9   :  { %3734 = shalt.err (%p4215_p13)  }
 0x5da   :  { %3736 = vsyncmov [#allocation3 + $0xd] }
 0x5dd   :  { %s3737_s12 = vpop.sfrf %3736 }
 0x5de   :  { %p4216_p0 = scmp.ne.s32.totalorder %s3737_s12, 0 }
 0x5e0   :  { %3741 = shalt.err (%p4216_p0)  }
 0x5e1   :  { %3743 = vsyncmov [#allocation3 + $0xe] }
 0x5e4   :  { %s3744_s13 = vpop.sfrf %3743 }
 0x5e5   :  { %p4217_p1 = scmp.ne.s32.totalorder %s3744_s13, 0 }
 0x5e7   :  { %3748 = shalt.err (%p4217_p1)  }
 0x5e8   :  { %3750 = vsyncmov [#allocation3 + $0xf] }
 0x5eb   :  { %s3751_s14 = vpop.sfrf %3750 }
 0x5ec   :  { %p4218_p2 = scmp.ne.s32.totalorder %s3751_s14, 0 }
 0x5ee   :  { %3755 = shalt.err (%p4218_p2)  }

</bundles_post_ra>
